<compile_context>
chip_gen: v7x
topology: tpu7x:2x2x1
jax: 0.10.0
libtpu: 0.0.40
codegen_flags: <defaults>
</compile_context>

<pallas_src>
import functools

import jax
import jax.numpy as jnp
from jax.experimental import pallas as pl
from jax.experimental.pallas import tpu as pltpu

# Problem sizes (small, consistent with an image-CAM module).
B = 2
C_IN = 4
H = W = 16
C_FEAT = 32
KH = KW = 3
K_PAD = 128  # im2col contraction dim (36) zero-padded to a full lane width


def cam_mse_kernel(patches_ref, wconv_ref, bconv_ref, wcam_ref, out_ref,
                   *, inv_n):
    """Single invocation (grid=()).

    patches_ref : (2*B*H*W, K_PAD)  im2col rows; first B*H*W rows = adv,
                                    last B*H*W rows = org (zero-padded K dim)
    wconv_ref   : (K_PAD, C_FEAT)   flattened HWIO conv weight (zero pad rows)
    bconv_ref   : (1, C_FEAT)       conv bias
    wcam_ref    : (C_FEAT, 1)       CAM 1x1 projection weight
    out_ref     : (1, 1) f32        MSE(cam(adv), cam(org))
    """
    # One fused MXU matmul covering the 3x3 conv for BOTH images.
    acc = jnp.dot(patches_ref[...], wconv_ref[...],
                  preferred_element_type=jnp.float32)        # (2*B*H*W, C_FEAT)
    feat = jnp.maximum(acc + bconv_ref[...], 0.0)            # bias + ReLU

    m = feat.shape[0] // 2                                    # B*H*W (static)
    fdiff = feat[:m, :] - feat[m:, :]                         # relu(adv)-relu(org)

    # Linearity: relu(a)@w - relu(b)@w == (relu(a)-relu(b))@w -> one projection.
    mask_diff = jnp.dot(fdiff, wcam_ref[...],
                        preferred_element_type=jnp.float32)   # (B*H*W, 1)

    sse = jnp.sum(mask_diff * mask_diff, axis=0, keepdims=True)   # (1, 1)
    out_ref[...] = sse * inv_n                                # mean reduction


def cam_criteria_forward(adv_nchw, org_nchw, w_conv, b_conv, w_cam):
    """adv/org in PyTorch NCHW; returns scalar MSE(cam(adv), cam(org))."""
    Bv, Cv, Hv, Wv = adv_nchw.shape
    k = KH * KW * Cv

    # --- glue (cheap, fused by XLA): stack adv+org, NCHW->NHWC, pad, im2col ---
    x = jnp.concatenate([adv_nchw, org_nchw], axis=0)            # (2B, C, H, W)
    x = jnp.transpose(x, (0, 2, 3, 1))                           # (2B, H, W, C)
    xp = jnp.pad(x, ((0, 0), (1, 1), (1, 1), (0, 0)))            # conv padding=1
    # Column order (kh, kw, cin) matches w_conv.reshape(KH*KW*C_IN, C_FEAT).
    cols = [xp[:, kh:kh + Hv, kw:kw + Wv, :]
            for kh in range(KH) for kw in range(KW)]
    patches = jnp.concatenate(cols, axis=-1).reshape(2 * Bv * Hv * Wv, k)
    # Zero-pad the contraction dim to 128 lanes (matching zero weight rows).
    patches = jnp.pad(patches, ((0, 0), (0, K_PAD - k)))
    w_flat = jnp.pad(w_conv.reshape(k, C_FEAT), ((0, K_PAD - k), (0, 0)))
    b_row = b_conv.reshape(1, C_FEAT)

    n_elems = Bv * 1 * Hv * Wv                     # CAM output is [B,1,H,W]
    kernel = functools.partial(cam_mse_kernel, inv_n=1.0 / float(n_elems))

    out = pl.pallas_call(
        kernel,
        out_shape=jax.ShapeDtypeStruct((1, 1), jnp.float32),
        in_specs=[
            pl.BlockSpec(memory_space=pltpu.MemorySpace.VMEM),  # patches
            pl.BlockSpec(memory_space=pltpu.MemorySpace.VMEM),  # conv weight
            pl.BlockSpec(memory_space=pltpu.MemorySpace.VMEM),  # conv bias
            pl.BlockSpec(memory_space=pltpu.MemorySpace.VMEM),  # cam weight
        ],
        out_specs=pl.BlockSpec(memory_space=pltpu.MemorySpace.VMEM),
    )(patches, w_flat, b_row, w_cam)

    return out[0, 0]                               # nn.MSELoss(reduction='mean')


# ---------------- pure-JAX reference (for verification only) ----------------
def _cam_ref(x_nhwc, w_conv, b_conv, w_cam):
    feat = jax.lax.conv_general_dilated(
        x_nhwc, w_conv, window_strides=(1, 1), padding="SAME",
        dimension_numbers=("NHWC", "HWIO", "NHWC"))
    feat = jax.nn.relu(feat + b_conv.reshape(1, 1, 1, -1))
    return jnp.einsum("bhwc,co->bhwo", feat, w_cam)


def _cam_criteria_ref(adv_nchw, org_nchw, w_conv, b_conv, w_cam):
    a = jnp.transpose(adv_nchw, (0, 2, 3, 1))
    o = jnp.transpose(org_nchw, (0, 2, 3, 1))
    ma = _cam_ref(a, w_conv, b_conv, w_cam)
    mo = _cam_ref(o, w_conv, b_conv, w_cam)
    return jnp.mean((ma - mo) ** 2)


if __name__ == "__main__":
    key = jax.random.PRNGKey(0)
    k_adv, k_org, k_w, k_b, k_cam = jax.random.split(key, 5)

    # Deterministic synthetic inputs (torch NCHW convention) and CAM params.
    adv = jax.random.normal(k_adv, (B, C_IN, H, W), jnp.float32)
    org = adv + 0.1 * jax.random.normal(k_org, (B, C_IN, H, W), jnp.float32)
    w_conv = 0.1 * jax.random.normal(k_w, (KH, KW, C_IN, C_FEAT), jnp.float32)
    b_conv = 0.05 * jax.random.normal(k_b, (C_FEAT,), jnp.float32)
    w_cam = 0.1 * jax.random.normal(k_cam, (C_FEAT, 1), jnp.float32)

    mse_pallas = jax.block_until_ready(
        jax.jit(cam_criteria_forward)(adv, org, w_conv, b_conv, w_cam))
    mse_ref = jax.block_until_ready(
        _cam_criteria_ref(adv, org, w_conv, b_conv, w_cam))

    assert jnp.allclose(mse_pallas, mse_ref, rtol=1e-3, atol=1e-6), (
        mse_pallas, mse_ref)
    print("KERNEL_OK")
</pallas_src>

<mosaic_0001>
module attributes {stable_mosaic.version = 11 : i64} {
  func.func @cam_mse_kernel(%arg0: memref<1024x128xf32, #tpu.memory_space<vmem>>, %arg1: memref<128x32xf32, #tpu.memory_space<vmem>>, %arg2: memref<1x32xf32, #tpu.memory_space<vmem>>, %arg3: memref<32x1xf32, #tpu.memory_space<vmem>>, %arg4: memref<1x1xf32, #tpu.memory_space<vmem>>) attributes {dimension_semantics = [], scalar_prefetch = 0 : i64, scratch_operands = 0 : i64, tpu.core_type = #tpu.core_type<tc>} {
    %c0 = arith.constant 0 : index
    %c0_0 = arith.constant 0 : index
    %0 = vector.load %arg0[%c0, %c0_0] : memref<1024x128xf32, #tpu.memory_space<vmem>>, vector<1024x128xf32>
    %c0_1 = arith.constant 0 : index
    %c0_2 = arith.constant 0 : index
    %1 = vector.load %arg1[%c0_1, %c0_2] : memref<128x32xf32, #tpu.memory_space<vmem>>, vector<128x32xf32>
    %cst = arith.constant dense<0.000000e+00> : vector<1024x32xf32>
    %2 = tpu.matmul %0, %1, %cst {dimension_numbers = #tpu.dot_dimension_numbers<[1], [0], [0], [1], [0, 0, 1, 1], [], []>} : vector<1024x128xf32>, vector<128x32xf32>, vector<1024x32xf32> -> vector<1024x32xf32>
    %c0_3 = arith.constant 0 : index
    %c0_4 = arith.constant 0 : index
    %3 = vector.load %arg2[%c0_3, %c0_4] : memref<1x32xf32, #tpu.memory_space<vmem>>, vector<1x32xf32>
    %4 = vector.broadcast %3 : vector<1x32xf32> to vector<1024x32xf32>
    %5 = arith.addf %2, %4 : vector<1024x32xf32>
    %cst_5 = arith.constant 0.000000e+00 : f32
    %6 = vector.broadcast %cst_5 : f32 to vector<1024x32xf32>
    %7 = arith.maximumf %5, %6 : vector<1024x32xf32>
    %8 = vector.extract_strided_slice %7 {offsets = [0, 0], sizes = [512, 32], strides = [1, 1]} : vector<1024x32xf32> to vector<512x32xf32>
    %9 = vector.extract_strided_slice %7 {offsets = [512, 0], sizes = [512, 32], strides = [1, 1]} : vector<1024x32xf32> to vector<512x32xf32>
    %10 = arith.subf %8, %9 : vector<512x32xf32>
    %c0_6 = arith.constant 0 : index
    %c0_7 = arith.constant 0 : index
    %11 = vector.load %arg3[%c0_6, %c0_7] : memref<32x1xf32, #tpu.memory_space<vmem>>, vector<32x1xf32>
    %cst_8 = arith.constant dense<0.000000e+00> : vector<512x1xf32>
    %12 = tpu.matmul %10, %11, %cst_8 {dimension_numbers = #tpu.dot_dimension_numbers<[1], [0], [0], [1], [0, 0, 1, 1], [], []>} : vector<512x32xf32>, vector<32x1xf32>, vector<512x1xf32> -> vector<512x1xf32>
    %13 = arith.mulf %12, %12 : vector<512x1xf32>
    %cst_9 = arith.constant dense<0.000000e+00> : vector<1xf32>
    %14 = vector.multi_reduction <add>, %13, %cst_9 [0] : vector<512x1xf32> to vector<1xf32>
    %15 = vector.shape_cast %14 : vector<1xf32> to vector<1x1xf32>
    %cst_10 = arith.constant 0.001953125 : f32
    %16 = vector.broadcast %cst_10 : f32 to vector<1x1xf32>
    %17 = arith.mulf %15, %16 : vector<1x1xf32>
    %c0_11 = arith.constant 0 : index
    %c0_12 = arith.constant 0 : index
    %18 = vector.load %arg4[%c0_11, %c0_12] : memref<1x1xf32, #tpu.memory_space<vmem>>, vector<1x1xf32>
    tpu.vector_store %arg4[%c0_11, %c0_12], %17 {strides = array<i32>} : memref<1x1xf32, #tpu.memory_space<vmem>>, vector<1x1xf32>,
    return
  }
}

</mosaic_0001>

<bundles_post_ra>
// kernel: cam_criteria_forward.1
= control target key start
LH: loop header
LB: loop body
LE: loop exit
PB: predicated region body
PF: predicated region fallthrough
CT: control target
= control target key end

     0   :  { %s3580_s0 = inlined_call_operand.vmem [shape: f32[1024,128], index: 0, kind: input, shape index: {}]   ;;  %s3581_s1 = inlined_call_operand.vmem [shape: f32[128,32], index: 1, kind: input, shape index: {}]   ;;  %s3582_s2 = inlined_call_operand.vmem [shape: f32[1,32], index: 2, kind: input, shape index: {}]   ;;  %s3583_s3 = inlined_call_operand.vmem [shape: f32[32,1], index: 3, kind: input, shape index: {}]   ;;  %s3584_s4 = inlined_call_operand.hbm [shape: f32[1,1], index: 4, kind: output, shape index: {}]  }
   0x1   :  { %v146_v0 = vld [vmem:[%s3581_s1] sm:$0xff]  ;;  %v147_v1 = vld [vmem:[%s3581_s1 + $0x8] sm:$0xff]  ;;  %v148_v2 = vld [vmem:[%s3581_s1 + $0x10] sm:$0xff] }
   0x2   :  { %v2468_v3 = vpack.c.bf16 %v147_v1, %v146_v0  ;;  %v149_v4 = vld [vmem:[%s3581_s1 + $0x18] sm:$0xff]  ;;  %v150_v6 = vld [vmem:[%s3581_s1 + $0x20] sm:$0xff]  ;;  %v151_v7 = vld [vmem:[%s3581_s1 + $0x28] sm:$0xff] }
   0x3   :  { %v2472_v5 = vpack.c.bf16 %v149_v4, %v148_v2  ;;  %v2476_v8 = vpack.c.bf16 %v151_v7, %v150_v6  ;;  %v18_v9 = vld [vmem:[%s3580_s0] sm:$0xff]  ;;  %v152_v10 = vld [vmem:[%s3581_s1 + $0x30] sm:$0xff]  ;;  %v153_v11 = vld [vmem:[%s3581_s1 + $0x38] sm:$0xff] }
   0x4   :  { %2469 = vmatprep.subr.bf16.mxu0 %v2468_v3  ;;  %2508 = vmatprep.subr.bf16.mxu1 %v2468_v3  ;;  %v2480_v12 = vpack.c.bf16 %v153_v11, %v152_v10  ;;  %v154_v13 = vld [vmem:[%s3581_s1 + $0x40] sm:$0xff]  ;;  %v155_v14 = vld [vmem:[%s3581_s1 + $0x48] sm:$0xff]  ;;  %v156_v16 = vld [vmem:[%s3581_s1 + $0x50] sm:$0xff] }
   0x5   :  { %2471 = vmatpush3.bf16.msra.mxu0 %v2468_v3  ;;  %2516 = vmatpush3.bf16.msra.mxu1 %v2468_v3  ;;  %v2484_v15 = vpack.c.bf16 %v155_v14, %v154_v13  ;;  %v157_v17 = vld [vmem:[%s3581_s1 + $0x58] sm:$0xff]  ;;  %v114_v18 = vld [vmem:[%s3580_s0 + $0x300] sm:$0xff]  ;;  %v159_v21 = vld [vmem:[%s3581_s1 + $0x68] sm:$0xff] }
   0x6   :  { %2473 = vmatprep.subr.bf16.mxu0 %v2472_v5  ;;  %2509 = vmatprep.subr.bf16.mxu1 %v2472_v5  ;;  %v2488_v19 = vpack.c.bf16 %v157_v17, %v156_v16  ;;  %v158_v20 = vld [vmem:[%s3581_s1 + $0x60] sm:$0xff]  ;;  %v160_v23 = vld [vmem:[%s3581_s1 + $0x70] sm:$0xff]  ;;  %v161_v24 = vld [vmem:[%s3581_s1 + $0x78] sm:$0xff] }
   0x7   :  { %2172 = vmatprep.mubr.f32.mxu0 %v18_v9  ;;  %2316 = vmatprep.mubr.f32.mxu1 %v114_v18  ;;  %v2492_v22 = vpack.c.bf16 %v159_v21, %v158_v20  ;;  %v2496_v25 = vpack.c.bf16 %v161_v24, %v160_v23  ;;  %v19_v26 = vld [vmem:[%s3580_s0 + $0x8] sm:$0xff]  ;;  %v20_v28 = vld [vmem:[%s3580_s0 + $0x10] sm:$0xff]  ;;  %v21_v30 = vld [vmem:[%s3580_s0 + $0x18] sm:$0xff] }
   0x8   :  { %v115_v27 = vld [vmem:[%s3580_s0 + $0x308] sm:$0xff]  ;;  %v116_v29 = vld [vmem:[%s3580_s0 + $0x310] sm:$0xff]  ;;  %v117_v31 = vld [vmem:[%s3580_s0 + $0x318] sm:$0xff] }
   0x9   :  { %2475 = vmatpush3.bf16.msra.mxu0 %v2472_v5  ;;  %2517 = vmatpush3.bf16.msra.mxu1 %v2472_v5  ;;  %v22_v32 = vld [vmem:[%s3580_s0 + $0x20] sm:$0xff] }
   0xa   :  { %2477 = vmatprep.subr.bf16.mxu0 %v2476_v8  ;;  %2510 = vmatprep.subr.bf16.mxu1 %v2476_v8  ;;  %v118_v33 = vld [vmem:[%s3580_s0 + $0x320] sm:$0xff] }
   0xd   :  { %2479 = vmatpush3.bf16.msra.mxu0 %v2476_v8  ;;  %2518 = vmatpush3.bf16.msra.mxu1 %v2476_v8 }
   0xe   :  { %2481 = vmatprep.subr.bf16.mxu0 %v2480_v12  ;;  %2511 = vmatprep.subr.bf16.mxu1 %v2480_v12 }
  0x11   :  { %2483 = vmatpush3.bf16.msra.mxu0 %v2480_v12  ;;  %2519 = vmatpush3.bf16.msra.mxu1 %v2480_v12 }
  0x12   :  { %2485 = vmatprep.subr.bf16.mxu0 %v2484_v15  ;;  %2512 = vmatprep.subr.bf16.mxu1 %v2484_v15 }
  0x15   :  { %2487 = vmatpush3.bf16.msra.mxu0 %v2484_v15  ;;  %2520 = vmatpush3.bf16.msra.mxu1 %v2484_v15 }
  0x16   :  { %2489 = vmatprep.subr.bf16.mxu0 %v2488_v19  ;;  %2513 = vmatprep.subr.bf16.mxu1 %v2488_v19 }
  0x19   :  { %2491 = vmatpush3.bf16.msra.mxu0 %v2488_v19  ;;  %2521 = vmatpush3.bf16.msra.mxu1 %v2488_v19 }
  0x1a   :  { %2493 = vmatprep.subr.bf16.mxu0 %v2492_v22  ;;  %2514 = vmatprep.subr.bf16.mxu1 %v2492_v22 }
  0x1d   :  { %2495 = vmatpush3.bf16.msra.mxu0 %v2492_v22  ;;  %2522 = vmatpush3.bf16.msra.mxu1 %v2492_v22 }
  0x1e   :  { %2497 = vmatprep.subr.bf16.mxu0 %v2496_v25  ;;  %2515 = vmatprep.subr.bf16.mxu1 %v2496_v25 }
  0x21   :  { %2499 = vmatpush3.bf16.msra.mxu0 %v2496_v25  ;;  %2523 = vmatpush3.bf16.msra.mxu1 %v2496_v25 }
  0x24   :  { %2173 = vmatmul.mubr.f32.vlgmr.msra.gmra.mrb[0].mxu0 %v19_v26  ;;  %2317 = vmatmul.mubr.f32.vlgmr.msra.gmra.mrb[0].mxu1 %v115_v27 }
  0x25   :  { %2175 = vmatprep.mubr.f32.mxu0 %v20_v28  ;;  %2319 = vmatprep.mubr.f32.mxu1 %v116_v29 }
  0x26   :  { %9 = vsyncpa [#allocation3], 0  ;;  %v23_v34 = vld [vmem:[%s3580_s0 + $0x28] sm:$0xff]  ;;  %v24_v36 = vld [vmem:[%s3580_s0 + $0x30] sm:$0xff]  ;;  %vm1070_vm0 = vcmask 261120   ;;  %vm1712_vm1 = vcmask 7168  }
  0x27   :  { %v119_v35 = vld [vmem:[%s3580_s0 + $0x328] sm:$0xff]  ;;  %v120_v37 = vld [vmem:[%s3580_s0 + $0x330] sm:$0xff]  ;;  %v25_v38 = vld [vmem:[%s3580_s0 + $0x38] sm:$0xff]  ;;  %vm1847_vm2 = vcmask 0  }
  0x28   :  { %2176 = vmatmul.mubr.f32.gmra.mrb[2].mxu0 %v21_v30  ;;  %2320 = vmatmul.mubr.f32.gmra.mrb[2].mxu1 %v117_v31  ;;  %v121_v39 = vld [vmem:[%s3580_s0 + $0x338] sm:$0xff]  ;;  %v26_v40 = vld [vmem:[%s3580_s0 + $0x40] sm:$0xff]  ;;  %v27_v42 = vld [vmem:[%s3580_s0 + $0x48] sm:$0xff] }
  0x29   :  { %2178 = vmatprep.mubr.f32.mxu0 %v22_v32  ;;  %2322 = vmatprep.mubr.f32.mxu1 %v118_v33  ;;  %v122_v41 = vld [vmem:[%s3580_s0 + $0x340] sm:$0xff]  ;;  %v123_v43 = vld [vmem:[%s3580_s0 + $0x348] sm:$0xff]  ;;  %v28_v44 = vld [vmem:[%s3580_s0 + $0x50] sm:$0xff] }
  0x2a   :  { %v124_v45 = vld [vmem:[%s3580_s0 + $0x350] sm:$0xff]  ;;  %v29_v46 = vld [vmem:[%s3580_s0 + $0x58] sm:$0xff]  ;;  %v30_v48 = vld [vmem:[%s3580_s0 + $0x60] sm:$0xff] }
  0x2b   :  { %v125_v47 = vld [vmem:[%s3580_s0 + $0x358] sm:$0xff]  ;;  %v126_v49 = vld [vmem:[%s3580_s0 + $0x360] sm:$0xff]  ;;  %v31_v50 = vld [vmem:[%s3580_s0 + $0x68] sm:$0xff] }
  0x2c   :  { %2179 = vmatmul.mubr.f32.gmra.mrb[4].mxu0 %v23_v34  ;;  %2323 = vmatmul.mubr.f32.gmra.mrb[4].mxu1 %v119_v35  ;;  %v127_v51 = vld [vmem:[%s3580_s0 + $0x368] sm:$0xff]  ;;  %v32_v52 = vld [vmem:[%s3580_s0 + $0x70] sm:$0xff]  ;;  %v33_v54 = vld [vmem:[%s3580_s0 + $0x78] sm:$0xff] }
  0x2d   :  { %2181 = vmatprep.mubr.f32.mxu0 %v24_v36  ;;  %2325 = vmatprep.mubr.f32.mxu1 %v120_v37  ;;  %v128_v53 = vld [vmem:[%s3580_s0 + $0x370] sm:$0xff]  ;;  %v129_v55 = vld [vmem:[%s3580_s0 + $0x378] sm:$0xff]  ;;  %v34_v56 = vld [vmem:[%s3580_s0 + $0x80] sm:$0xff] }
  0x2e   :  { %v130_v57 = vld [vmem:[%s3580_s0 + $0x380] sm:$0xff]  ;;  %v35_v58 = vld [vmem:[%s3580_s0 + $0x88] sm:$0xff]  ;;  %v36_v60 = vld [vmem:[%s3580_s0 + $0x90] sm:$0xff] }
  0x2f   :  { %v131_v59 = vld [vmem:[%s3580_s0 + $0x388] sm:$0xff]  ;;  %v132_v61 = vld [vmem:[%s3580_s0 + $0x390] sm:$0xff]  ;;  %v37_v62 = vld [vmem:[%s3580_s0 + $0x98] sm:$0xff] }
  0x30   :  { %2182 = vmatmul.mubr.f32.gmra.mrb[6].mxu0 %v25_v38  ;;  %2326 = vmatmul.mubr.f32.gmra.mrb[6].mxu1 %v121_v39  ;;  %v133_v63 = vld [vmem:[%s3580_s0 + $0x398] sm:$0xff]  ;;  %v38_v0 = vld [vmem:[%s3580_s0 + $0xa0] sm:$0xff]  ;;  %v39_v2 = vld [vmem:[%s3580_s0 + $0xa8] sm:$0xff] }
  0x31   :  { %2184 = vmatprep.mubr.f32.mxu0 %v26_v40  ;;  %2328 = vmatprep.mubr.f32.mxu1 %v122_v41  ;;  %v134_v1 = vld [vmem:[%s3580_s0 + $0x3a0] sm:$0xff]  ;;  %v135_v3 = vld [vmem:[%s3580_s0 + $0x3a8] sm:$0xff]  ;;  %v40_v4 = vld [vmem:[%s3580_s0 + $0xb0] sm:$0xff] }
  0x32   :  { %v136_v5 = vld [vmem:[%s3580_s0 + $0x3b0] sm:$0xff]  ;;  %v41_v6 = vld [vmem:[%s3580_s0 + $0xb8] sm:$0xff]  ;;  %v42_v8 = vld [vmem:[%s3580_s0 + $0xc0] sm:$0xff] }
  0x33   :  { %v137_v7 = vld [vmem:[%s3580_s0 + $0x3b8] sm:$0xff]  ;;  %v138_v9 = vld [vmem:[%s3580_s0 + $0x3c0] sm:$0xff]  ;;  %v43_v10 = vld [vmem:[%s3580_s0 + $0xc8] sm:$0xff] }
  0x34   :  { %2185 = vmatmul.mubr.f32.gmra.mrb[8].mxu0 %v27_v42  ;;  %2329 = vmatmul.mubr.f32.gmra.mrb[8].mxu1 %v123_v43  ;;  %v139_v11 = vld [vmem:[%s3580_s0 + $0x3c8] sm:$0xff]  ;;  %v44_v12 = vld [vmem:[%s3580_s0 + $0xd0] sm:$0xff]  ;;  %v45_v14 = vld [vmem:[%s3580_s0 + $0xd8] sm:$0xff] }
  0x35   :  { %2187 = vmatprep.mubr.f32.mxu0 %v28_v44  ;;  %2331 = vmatprep.mubr.f32.mxu1 %v124_v45  ;;  %v140_v13 = vld [vmem:[%s3580_s0 + $0x3d0] sm:$0xff]  ;;  %v141_v15 = vld [vmem:[%s3580_s0 + $0x3d8] sm:$0xff]  ;;  %v46_v16 = vld [vmem:[%s3580_s0 + $0xe0] sm:$0xff] }
  0x36   :  { %v142_v17 = vld [vmem:[%s3580_s0 + $0x3e0] sm:$0xff]  ;;  %v47_v18 = vld [vmem:[%s3580_s0 + $0xe8] sm:$0xff]  ;;  %v48_v20 = vld [vmem:[%s3580_s0 + $0xf0] sm:$0xff] }
  0x37   :  { %v143_v19 = vld [vmem:[%s3580_s0 + $0x3e8] sm:$0xff]  ;;  %v144_v21 = vld [vmem:[%s3580_s0 + $0x3f0] sm:$0xff]  ;;  %v49_v22 = vld [vmem:[%s3580_s0 + $0xf8] sm:$0xff] }
  0x38   :  { %2188 = vmatmul.mubr.f32.gmra.mrb[10].mxu0 %v29_v46  ;;  %2332 = vmatmul.mubr.f32.gmra.mrb[10].mxu1 %v125_v47  ;;  %v145_v23 = vld [vmem:[%s3580_s0 + $0x3f8] sm:$0xff]  ;;  %v50_v24 = vld [vmem:[%s3580_s0 + $0x100] sm:$0xff]  ;;  %v51_v25 = vld [vmem:[%s3580_s0 + $0x108] sm:$0xff] }
  0x39   :  { %2190 = vmatprep.mubr.f32.mxu0 %v30_v48  ;;  %2334 = vmatprep.mubr.f32.mxu1 %v126_v49  ;;  %v52_v26 = vld [vmem:[%s3580_s0 + $0x110] sm:$0xff]  ;;  %v53_v27 = vld [vmem:[%s3580_s0 + $0x118] sm:$0xff]  ;;  %v54_v28 = vld [vmem:[%s3580_s0 + $0x120] sm:$0xff] }
  0x3a   :  { %v55_v29 = vld [vmem:[%s3580_s0 + $0x128] sm:$0xff]  ;;  %v56_v30 = vld [vmem:[%s3580_s0 + $0x130] sm:$0xff]  ;;  %v57_v31 = vld [vmem:[%s3580_s0 + $0x138] sm:$0xff] }
  0x3b   :  { %v58_v32 = vld [vmem:[%s3580_s0 + $0x140] sm:$0xff]  ;;  %v59_v33 = vld [vmem:[%s3580_s0 + $0x148] sm:$0xff]  ;;  %v60_v34 = vld [vmem:[%s3580_s0 + $0x150] sm:$0xff] }
  0x3c   :  { %2191 = vmatmul.mubr.f32.gmra.mrb[12].mxu0 %v31_v50  ;;  %2335 = vmatmul.mubr.f32.gmra.mrb[12].mxu1 %v127_v51  ;;  %v61_v35 = vld [vmem:[%s3580_s0 + $0x158] sm:$0xff]  ;;  %v62_v36 = vld [vmem:[%s3580_s0 + $0x160] sm:$0xff]  ;;  %v63_v37 = vld [vmem:[%s3580_s0 + $0x168] sm:$0xff] }
  0x3d   :  { %2193 = vmatprep.mubr.f32.mxu0 %v32_v52  ;;  %2337 = vmatprep.mubr.f32.mxu1 %v128_v53  ;;  %v64_v38 = vld [vmem:[%s3580_s0 + $0x170] sm:$0xff]  ;;  %v65_v39 = vld [vmem:[%s3580_s0 + $0x178] sm:$0xff]  ;;  %v66_v40 = vld [vmem:[%s3580_s0 + $0x180] sm:$0xff] }
  0x3e   :  { %v67_v41 = vld [vmem:[%s3580_s0 + $0x188] sm:$0xff]  ;;  %v68_v42 = vld [vmem:[%s3580_s0 + $0x190] sm:$0xff]  ;;  %v69_v43 = vld [vmem:[%s3580_s0 + $0x198] sm:$0xff] }
  0x3f   :  { %v70_v44 = vld [vmem:[%s3580_s0 + $0x1a0] sm:$0xff]  ;;  %v71_v45 = vld [vmem:[%s3580_s0 + $0x1a8] sm:$0xff]  ;;  %v72_v46 = vld [vmem:[%s3580_s0 + $0x1b0] sm:$0xff] }
  0x40   :  { %2194 = vmatmul.mubr.f32.gmra.mrb[14].mxu0 %v33_v54  ;;  %2338 = vmatmul.mubr.f32.gmra.mrb[14].mxu1 %v129_v55  ;;  %v73_v47 = vld [vmem:[%s3580_s0 + $0x1b8] sm:$0xff]  ;;  %v74_v48 = vld [vmem:[%s3580_s0 + $0x1c0] sm:$0xff]  ;;  %v75_v49 = vld [vmem:[%s3580_s0 + $0x1c8] sm:$0xff] }
  0x41   :  { %2196 = vmatprep.mubr.f32.mxu0 %v34_v56  ;;  %2340 = vmatprep.mubr.f32.mxu1 %v130_v57  ;;  %v76_v50 = vld [vmem:[%s3580_s0 + $0x1d0] sm:$0xff]  ;;  %v77_v51 = vld [vmem:[%s3580_s0 + $0x1d8] sm:$0xff]  ;;  %v78_v52 = vld [vmem:[%s3580_s0 + $0x1e0] sm:$0xff] }
  0x42   :  { %v79_v53 = vld [vmem:[%s3580_s0 + $0x1e8] sm:$0xff]  ;;  %v80_v54 = vld [vmem:[%s3580_s0 + $0x1f0] sm:$0xff]  ;;  %v81_v55 = vld [vmem:[%s3580_s0 + $0x1f8] sm:$0xff] }
  0x43   :  { %v82_v56 = vld [vmem:[%s3580_s0 + $0x200] sm:$0xff]  ;;  %v83_v57 = vld [vmem:[%s3580_s0 + $0x208] sm:$0xff] }
  0x44   :  { %2197 = vmatmul.mubr.f32.gmra.mrb[16].mxu0 %v35_v58  ;;  %2341 = vmatmul.mubr.f32.gmra.mrb[16].mxu1 %v131_v59  ;;  %v84_v58 = vld [vmem:[%s3580_s0 + $0x210] sm:$0xff]  ;;  %v85_v59 = vld [vmem:[%s3580_s0 + $0x218] sm:$0xff] }
  0x45   :  { %2199 = vmatprep.mubr.f32.mxu0 %v36_v60  ;;  %2343 = vmatprep.mubr.f32.mxu1 %v132_v61  ;;  %v86_v60 = vld [vmem:[%s3580_s0 + $0x220] sm:$0xff]  ;;  %v87_v61 = vld [vmem:[%s3580_s0 + $0x228] sm:$0xff] }
  0x48   :  { %2200 = vmatmul.mubr.f32.gmra.mrb[18].mxu0 %v37_v62  ;;  %2344 = vmatmul.mubr.f32.gmra.mrb[18].mxu1 %v133_v63  ;;  %v88_v62 = vld [vmem:[%s3580_s0 + $0x230] sm:$0xff]  ;;  %v89_v63 = vld [vmem:[%s3580_s0 + $0x238] sm:$0xff] }
  0x49   :  { %2202 = vmatprep.mubr.f32.mxu0 %v38_v0  ;;  %2346 = vmatprep.mubr.f32.mxu1 %v134_v1  ;;  %v90_v0 = vld [vmem:[%s3580_s0 + $0x240] sm:$0xff]  ;;  %v91_v1 = vld [vmem:[%s3580_s0 + $0x248] sm:$0xff] }
  0x4c   :  { %2203 = vmatmul.mubr.f32.gmra.mrb[20].mxu0 %v39_v2  ;;  %2347 = vmatmul.mubr.f32.gmra.mrb[20].mxu1 %v135_v3  ;;  %v92_v2 = vld [vmem:[%s3580_s0 + $0x250] sm:$0xff]  ;;  %v93_v3 = vld [vmem:[%s3580_s0 + $0x258] sm:$0xff] }
  0x4d   :  { %2205 = vmatprep.mubr.f32.mxu0 %v40_v4  ;;  %2349 = vmatprep.mubr.f32.mxu1 %v136_v5  ;;  %v94_v4 = vld [vmem:[%s3580_s0 + $0x260] sm:$0xff]  ;;  %v95_v5 = vld [vmem:[%s3580_s0 + $0x268] sm:$0xff] }
  0x50   :  { %2206 = vmatmul.mubr.f32.gmra.mrb[22].mxu0 %v41_v6  ;;  %2350 = vmatmul.mubr.f32.gmra.mrb[22].mxu1 %v137_v7  ;;  %v96_v6 = vld [vmem:[%s3580_s0 + $0x270] sm:$0xff]  ;;  %v97_v7 = vld [vmem:[%s3580_s0 + $0x278] sm:$0xff] }
  0x51   :  { %2208 = vmatprep.mubr.f32.mxu0 %v42_v8  ;;  %2352 = vmatprep.mubr.f32.mxu1 %v138_v9  ;;  %v98_v8 = vld [vmem:[%s3580_s0 + $0x280] sm:$0xff]  ;;  %v99_v9 = vld [vmem:[%s3580_s0 + $0x288] sm:$0xff] }
  0x54   :  { %2209 = vmatmul.mubr.f32.gmra.mrb[24].mxu0 %v43_v10  ;;  %2353 = vmatmul.mubr.f32.gmra.mrb[24].mxu1 %v139_v11  ;;  %v100_v10 = vld [vmem:[%s3580_s0 + $0x290] sm:$0xff]  ;;  %v1066_v11 = vld [vmem:[%s3583_s3] sm:$0xff] }
  0x55   :  { %2211 = vmatprep.mubr.f32.mxu0 %v44_v12  ;;  %2355 = vmatprep.mubr.f32.mxu1 %v140_v13  ;;  %v1067_v12 = vld [vmem:[%s3583_s3 + $0x8] sm:$0xff]  ;;  %v101_v13 = vld [vmem:[%s3580_s0 + $0x298] sm:$0xff] }
  0x58   :  { %2212 = vmatmul.mubr.f32.gmra.mrb[26].mxu0 %v45_v14  ;;  %2356 = vmatmul.mubr.f32.gmra.mrb[26].mxu1 %v141_v15  ;;  %v2500_v14 = vpack.c.bf16 %v1067_v12, %v1066_v11  ;;  %v102_v15 = vld [vmem:[%s3580_s0 + $0x2a0] sm:$0xff] }
  0x59   :  { %2214 = vmatprep.mubr.f32.mxu0 %v46_v16  ;;  %2358 = vmatprep.mubr.f32.mxu1 %v142_v17  ;;  %v103_v16 = vld [vmem:[%s3580_s0 + $0x2a8] sm:$0xff]  ;;  %v104_v17 = vld [vmem:[%s3580_s0 + $0x2b0] sm:$0xff] }
  0x5a   :  { %2501 = vmatprep.subr.bf16.mxu1 %v2500_v14 }
  0x5b   :  { %2503 = vmatpush3.bf16.msra.mxu1 %v2500_v14 }
  0x5c   :  { %2215 = vmatmul.mubr.f32.gmra.mrb[28].mxu0 %v47_v18  ;;  %2359 = vmatmul.mubr.f32.gmra.mrb[28].mxu1 %v143_v19  ;;  %v105_v18 = vld [vmem:[%s3580_s0 + $0x2b8] sm:$0xff]  ;;  %v106_v19 = vld [vmem:[%s3580_s0 + $0x2c0] sm:$0xff] }
  0x5d   :  { %2217 = vmatprep.mubr.f32.mxu0 %v48_v20  ;;  %2361 = vmatprep.mubr.f32.mxu1 %v144_v21  ;;  %v107_v20 = vld [vmem:[%s3580_s0 + $0x2c8] sm:$0xff]  ;;  %v108_v21 = vld [vmem:[%s3580_s0 + $0x2d0] sm:$0xff] }
  0x60   :  { %2218 = vmatmul.mubr.f32.gmra.mrb[30].mxu0 %v49_v22  ;;  %2362 = vmatmul.mubr.f32.gmra.mrb[30].mxu1 %v145_v23  ;;  %v109_v22 = vld [vmem:[%s3580_s0 + $0x2d8] sm:$0xff]  ;;  %v110_v23 = vld [vmem:[%s3580_s0 + $0x2e0] sm:$0xff] }
  0x61   :  { %2220 = vmatprep.mubr.f32.mxu0 %v50_v24  ;;  %v111_v24 = vld [vmem:[%s3580_s0 + $0x2e8] sm:$0xff] }
  0x64   :  { %2221 = vmatmul.mubr.f32.gmra.mrb[32].mxu0 %v51_v25  ;;  %v112_v25 = vld [vmem:[%s3580_s0 + $0x2f0] sm:$0xff] }
  0x65   :  { %2223 = vmatprep.mubr.f32.mxu0 %v52_v26  ;;  %v113_v26 = vld [vmem:[%s3580_s0 + $0x2f8] sm:$0xff] }
  0x68   :  { %2224 = vmatmul.mubr.f32.gmra.mrb[34].mxu0 %v53_v27  ;;  %v1068_v27 = vld [vmem:[%s3583_s3 + $0x10] sm:$0xff] }
  0x69   :  { %2226 = vmatprep.mubr.f32.mxu0 %v54_v28  ;;  %v1069_v28 = vld [vmem:[%s3583_s3 + $0x18] sm:$0xff] }
  0x6c   :  { %2227 = vmatmul.mubr.f32.gmra.mrb[36].mxu0 %v55_v29  ;;  %v2504_v29 = vpack.c.bf16 %v1069_v28, %v1068_v27 }
  0x6d   :  { %2229 = vmatprep.mubr.f32.mxu0 %v56_v30 }
  0x6e   :  { %2505 = vmatprep.subr.bf16.mxu1 %v2504_v29 }
  0x6f   :  { %2507 = vmatpush3.bf16.msra.mxu1 %v2504_v29 }
  0x70   :  { %2230 = vmatmul.mubr.f32.gmra.mrb[38].mxu0 %v57_v31 }
  0x71   :  { %2232 = vmatprep.mubr.f32.mxu0 %v58_v32 }
  0x74   :  { %2233 = vmatmul.mubr.f32.gmra.mrb[40].mxu0 %v59_v33 }
  0x75   :  { %2235 = vmatprep.mubr.f32.mxu0 %v60_v34 }
  0x78   :  { %2236 = vmatmul.mubr.f32.gmra.mrb[42].mxu0 %v61_v35 }
  0x79   :  { %2238 = vmatprep.mubr.f32.mxu0 %v62_v36 }
  0x7c   :  { %2239 = vmatmul.mubr.f32.gmra.mrb[44].mxu0 %v63_v37 }
  0x7d   :  { %2241 = vmatprep.mubr.f32.mxu0 %v64_v38 }
  0x80   :  { %2242 = vmatmul.mubr.f32.gmra.mrb[46].mxu0 %v65_v39 }
  0x81   :  { %2244 = vmatprep.mubr.f32.mxu0 %v66_v40 }
  0x84   :  { %2245 = vmatmul.mubr.f32.gmra.mrb[48].mxu0 %v67_v41 }
  0x85   :  { %2247 = vmatprep.mubr.f32.mxu0 %v68_v42 }
  0x88   :  { %2248 = vmatmul.mubr.f32.gmra.mrb[50].mxu0 %v69_v43 }
  0x89   :  { %2250 = vmatprep.mubr.f32.mxu0 %v70_v44 }
  0x8c   :  { %2251 = vmatmul.mubr.f32.gmra.mrb[52].mxu0 %v71_v45 }
  0x8d   :  { %2253 = vmatprep.mubr.f32.mxu0 %v72_v46 }
  0x90   :  { %2254 = vmatmul.mubr.f32.gmra.mrb[54].mxu0 %v73_v47 }
  0x91   :  { %2256 = vmatprep.mubr.f32.mxu0 %v74_v48 }
  0x94   :  { %2257 = vmatmul.mubr.f32.gmra.mrb[56].mxu0 %v75_v49 }
  0x95   :  { %2259 = vmatprep.mubr.f32.mxu0 %v76_v50 }
  0x98   :  { %2260 = vmatmul.mubr.f32.gmra.mrb[58].mxu0 %v77_v51 }
  0x99   :  { %2262 = vmatprep.mubr.f32.mxu0 %v78_v52 }
  0x9c   :  { %2263 = vmatmul.mubr.f32.gmra.mrb[60].mxu0 %v79_v53 }
  0x9d   :  { %2265 = vmatprep.mubr.f32.mxu0 %v80_v54 }
  0xa0   :  { %2266 = vmatmul.mubr.f32.gmra.mrb[62].mxu0 %v81_v55 }
  0xa1   :  { %2268 = vmatprep.mubr.f32.mxu0 %v82_v56 }
  0xa4   :  { %2269 = vmatmul.mubr.f32.gmra.mrb[64].mxu0 %v83_v57 }
  0xa5   :  { %2271 = vmatprep.mubr.f32.mxu0 %v84_v58 }
  0xa8   :  { %2272 = vmatmul.mubr.f32.gmra.mrb[66].mxu0 %v85_v59 }
  0xa9   :  { %2274 = vmatprep.mubr.f32.mxu0 %v86_v60 }
  0xac   :  { %2275 = vmatmul.mubr.f32.gmra.mrb[68].mxu0 %v87_v61 }
  0xad   :  { %2277 = vmatprep.mubr.f32.mxu0 %v88_v62 }
  0xb0   :  { %2278 = vmatmul.mubr.f32.gmra.mrb[70].mxu0 %v89_v63 }
  0xb1   :  { %2280 = vmatprep.mubr.f32.mxu0 %v90_v0 }
  0xb4   :  { %2281 = vmatmul.mubr.f32.gmra.mrb[72].mxu0 %v91_v1 }
  0xb5   :  { %2283 = vmatprep.mubr.f32.mxu0 %v92_v2 }
  0xb8   :  { %2284 = vmatmul.mubr.f32.gmra.mrb[74].mxu0 %v93_v3 }
  0xb9   :  { %2286 = vmatprep.mubr.f32.mxu0 %v94_v4 }
  0xbc   :  { %2287 = vmatmul.mubr.f32.gmra.mrb[76].mxu0 %v95_v5 }
  0xbd   :  { %2289 = vmatprep.mubr.f32.mxu0 %v96_v6 }
  0xc0   :  { %2290 = vmatmul.mubr.f32.gmra.mrb[78].mxu0 %v97_v7 }
  0xc1   :  { %2292 = vmatprep.mubr.f32.mxu0 %v98_v8 }
  0xc4   :  { %2293 = vmatmul.mubr.f32.gmra.mrb[80].mxu0 %v99_v9 }
  0xc5   :  { %2295 = vmatprep.mubr.f32.mxu0 %v100_v10 }
  0xc8   :  { %2296 = vmatmul.mubr.f32.gmra.mrb[82].mxu0 %v101_v13 }
  0xc9   :  { %2298 = vmatprep.mubr.f32.mxu0 %v102_v15 }
  0xcc   :  { %2299 = vmatmul.mubr.f32.gmra.mrb[84].mxu0 %v103_v16 }
  0xcd   :  { %2301 = vmatprep.mubr.f32.mxu0 %v104_v17 }
  0xd0   :  { %2302 = vmatmul.mubr.f32.gmra.mrb[86].mxu0 %v105_v18 }
  0xd1   :  { %2304 = vmatprep.mubr.f32.mxu0 %v106_v19 }
  0xd4   :  { %2305 = vmatmul.mubr.f32.gmra.mrb[88].mxu0 %v107_v20 }
  0xd5   :  { %2307 = vmatprep.mubr.f32.mxu0 %v108_v21 }
  0xd8   :  { %2308 = vmatmul.mubr.f32.gmra.mrb[90].mxu0 %v109_v22 }
  0xd9   :  { %2310 = vmatprep.mubr.f32.mxu0 %v110_v23 }
  0xdc   :  { %2311 = vmatmul.mubr.f32.gmra.mrb[92].mxu0 %v111_v24 }
  0xdd   :  { %2313 = vmatprep.mubr.f32.mxu0 %v112_v25 }
  0xe0   :  { %2314 = vmatmul.mubr.f32.gmra.mrb[94].mxu0 %v113_v26  ;;  %v3142_v26 = vld [vmem:[%s3582_s2] ss:$0 sm:$0xff]  ;;  %s2549_s2 = smov [#allocation2]  }
  0xe1   :  { %s1855_s15 = sshll.u32 %s2549_s2, 4  ;;  %s1856_s15 = int_to_ptr.vmem [resolvable:$true] %s1855_s15 }
  0xe2   :  { %s2525_s16 = scalar_lea.vmem %s1856_s15, 16  ;;  %s2529_s17 = scalar_lea.vmem %s1856_s15, 32 }
  0xe3   :  { %p2526_p0 = scmp.ne.s32.totalorder %s1856_s15, %s2525_s16  ;;  %p2530_p1 = scmp.lt.s32.totalorder %s1856_s15, %s1856_s15 }
  0xe4   :  { %p2531_p2 = scmp.lt.s32.totalorder %s2529_s17, %s2525_s16 }
  0xe6   :  { %p2532_p3 = por %p2531_p2, %p2530_p1 }
  0xe8   :  { %p2533_p4 = pnand %p2532_p3, %p2526_p0 }
  0xf7   :  { %v3019_v30 = vpop.f32.mrb[0].mxu0  ;;  %v3021_v31 = vpop.f32.mrb[0].mxu1 }
  0xf8   :  { %v3023_v32 = vpop.f32.mrb[1].mxu0  ;;  %v3025_v33 = vpop.f32.mrb[1].mxu1 }
  0xfb   :  { %v3027_v34 = vpop.f32.mrb[2].mxu0  ;;  %v3029_v35 = vpop.f32.mrb[2].mxu1 }
  0xfc   :  { %v3031_v36 = vpop.f32.mrb[3].mxu0  ;;  %v3033_v37 = vpop.f32.mrb[3].mxu1 }
  0xff   :  { %v3035_v38 = vpop.f32.mrb[4].mxu0  ;;  %v3037_v39 = vpop.f32.mrb[4].mxu1 }
 0x100   :  { %v3039_v40 = vpop.f32.mrb[5].mxu0  ;;  %v3041_v41 = vpop.f32.mrb[5].mxu1 }
 0x103   :  { %v3043_v42 = vpop.f32.mrb[6].mxu0  ;;  %v3045_v43 = vpop.f32.mrb[6].mxu1 }
 0x104   :  { %v3047_v44 = vpop.f32.mrb[7].mxu0  ;;  %v3049_v45 = vpop.f32.mrb[7].mxu1 }
 0x107   :  { %v3051_v46 = vpop.f32.mrb[8].mxu0  ;;  %v3053_v47 = vpop.f32.mrb[8].mxu1 }
 0x108   :  { %v3055_v48 = vpop.f32.mrb[9].mxu0  ;;  %v3057_v49 = vpop.f32.mrb[9].mxu1 }
 0x10b   :  { %v3059_v50 = vpop.f32.mrb[10].mxu0  ;;  %v3061_v51 = vpop.f32.mrb[10].mxu1 }
 0x10c   :  { %v3063_v52 = vpop.f32.mrb[11].mxu0  ;;  %v3065_v53 = vpop.f32.mrb[11].mxu1 }
 0x10f   :  { %v3067_v54 = vpop.f32.mrb[12].mxu0  ;;  %v3069_v55 = vpop.f32.mrb[12].mxu1 }
 0x110   :  { %v3071_v56 = vpop.f32.mrb[13].mxu0  ;;  %v3073_v57 = vpop.f32.mrb[13].mxu1 }
 0x113   :  { %v3075_v58 = vpop.f32.mrb[14].mxu0  ;;  %v3077_v59 = vpop.f32.mrb[14].mxu1 }
 0x114   :  { %v3079_v60 = vpop.f32.mrb[15].mxu0  ;;  %v3081_v61 = vpop.f32.mrb[15].mxu1 }
 0x117   :  { %v3083_v62 = vpop.f32.mrb[16].mxu0  ;;  %v3085_v63 = vpop.f32.mrb[16].mxu1 }
 0x118   :  { %3585 = vst [vmem:[#allocation5_spill] sm:$0xff] %v3083_v62  ;;  %v3087_v0 = vpop.f32.mrb[17].mxu0  ;;  %v3089_v1 = vpop.f32.mrb[17].mxu1 }
 0x119   :  { %3586 = vst [vmem:[#allocation6_spill] sm:$0xff] %v3087_v0 }
 0x11b   :  { %v3091_v2 = vpop.f32.mrb[18].mxu0  ;;  %v3093_v3 = vpop.f32.mrb[18].mxu1 }
 0x11c   :  { %3587 = vst [vmem:[#allocation7_spill] sm:$0xff] %v3091_v2  ;;  %v3095_v4 = vpop.f32.mrb[19].mxu0  ;;  %v3097_v5 = vpop.f32.mrb[19].mxu1 }
 0x11d   :  { %3588 = vst [vmem:[#allocation8_spill] sm:$0xff] %v3095_v4 }
 0x11f   :  { %v3099_v6 = vpop.f32.mrb[20].mxu0  ;;  %v3101_v7 = vpop.f32.mrb[20].mxu1 }
 0x120   :  { %3589 = vst [vmem:[#allocation9_spill] sm:$0xff] %v3099_v6  ;;  %v3103_v8 = vpop.f32.mrb[21].mxu0  ;;  %v3105_v9 = vpop.f32.mrb[21].mxu1 }
 0x121   :  { %3590 = vst [vmem:[#allocation10_spill] sm:$0xff] %v3103_v8 }
 0x123   :  { %v3107_v10 = vpop.f32.mrb[22].mxu0  ;;  %v3109_v11 = vpop.f32.mrb[22].mxu1 }
 0x124   :  { %3591 = vst [vmem:[#allocation11_spill] sm:$0xff] %v3107_v10  ;;  %v3111_v12 = vpop.f32.mrb[23].mxu0  ;;  %v3113_v13 = vpop.f32.mrb[23].mxu1 }
 0x125   :  { %3592 = vst [vmem:[#allocation12_spill] sm:$0xff] %v3111_v12 }
 0x127   :  { %v3115_v14 = vpop.f32.mrb[24].mxu0  ;;  %v3117_v15 = vpop.f32.mrb[24].mxu1 }
 0x128   :  { %3593 = vst [vmem:[#allocation13_spill] sm:$0xff] %v3115_v14  ;;  %v3119_v16 = vpop.f32.mrb[25].mxu0  ;;  %v3121_v17 = vpop.f32.mrb[25].mxu1 }
 0x129   :  { %3594 = vst [vmem:[#allocation14_spill] sm:$0xff] %v3119_v16 }
 0x12b   :  { %v3123_v18 = vpop.f32.mrb[26].mxu0  ;;  %v3125_v19 = vpop.f32.mrb[26].mxu1 }
 0x12c   :  { %3595 = vst [vmem:[#allocation15_spill] sm:$0xff] %v3123_v18  ;;  %v3127_v20 = vpop.f32.mrb[27].mxu0  ;;  %v3129_v21 = vpop.f32.mrb[27].mxu1 }
 0x12d   :  { %3596 = vst [vmem:[#allocation16_spill] sm:$0xff] %v3127_v20 }
 0x12f   :  { %v3131_v22 = vpop.f32.mrb[28].mxu0  ;;  %v3133_v23 = vpop.f32.mrb[28].mxu1 }
 0x130   :  { %3597 = vst [vmem:[#allocation17_spill] sm:$0xff] %v3131_v22  ;;  %v3135_v24 = vpop.f32.mrb[29].mxu0  ;;  %v3137_v25 = vpop.f32.mrb[29].mxu1  ;;  %v721_v22 = vadd.f32 %v3021_v31, %v3142_v26 }
 0x131   :  { %3598 = vst [vmem:[#allocation18_spill] sm:$0xff] %v3135_v24  ;;  %v716_v24 = vadd.f32 %v3142_v26, %v3025_v33 }
 0x132   :  { %v971_v14 = vmax.f32 %v721_v22, 0.0  ;;  %v741_v22 = vadd.f32 %v3037_v39, %v3142_v26  ;;  %v751_v39 = vadd.f32 %v3045_v43, %v3142_v26  ;;  %v761_v43 = vadd.f32 %v3053_v47, %v3142_v26 }
 0x133   :  { %v3144_v27 = vpop.f32.mrb[30].mxu0  ;;  %v3146_v28 = vpop.f32.mrb[30].mxu1  ;;  %v970_v8 = vmax.f32 %v716_v24, 0.0  ;;  %v771_v47 = vadd.f32 %v3061_v51, %v3142_v26  ;;  %v781_v51 = vadd.f32 %v3069_v55, %v3142_v26  ;;  %v791_v55 = vadd.f32 %v3077_v59, %v3142_v26 }
 0x134   :  { %3599 = vst [vmem:[#allocation19_spill] sm:$0xff] %v3144_v27  ;;  %v3148_v29 = vpop.f32.mrb[31].mxu0  ;;  %v3152_v20 = vpop.f32.mrb[31].mxu1  ;;  %v731_v27 = vadd.f32 %v3029_v35, %v3142_v26  ;;  %v801_v59 = vadd.f32 %v3085_v63, %v3142_v26  ;;  %v811_v63 = vadd.f32 %v3093_v3, %v3142_v26  ;;  %v821_v3 = vadd.f32 %v3101_v7, %v3142_v26 }
 0x135   :  { %3600 = vst [vmem:[#allocation20_spill] sm:$0xff] %v3148_v29  ;;  %v726_v29 = vadd.f32 %v3142_v26, %v3033_v37  ;;  %v736_v37 = vadd.f32 %v3142_v26, %v3041_v41  ;;  %v746_v41 = vadd.f32 %v3142_v26, %v3049_v45  ;;  %v756_v45 = vadd.f32 %v3142_v26, %v3057_v49 }
 0x136   :  { %v973_v0 = vmax.f32 %v731_v27, 0.0  ;;  %v975_v27 = vmax.f32 %v741_v22, 0.0  ;;  %v977_v22 = vmax.f32 %v751_v39, 0.0  ;;  %v979_v39 = vmax.f32 %v761_v43, 0.0 }
 0x137   :  { %v2222_v18 = vpop.f32.mrb[32].mxu0  ;;  %v766_v49 = vadd.f32 %v3142_v26, %v3065_v53  ;;  %v981_v43 = vmax.f32 %v771_v47, 0.0  ;;  %v776_v53 = vadd.f32 %v3142_v26, %v3073_v57  ;;  %v983_v47 = vmax.f32 %v781_v51, 0.0 }
 0x138   :  { %v401_v16 = vadd.f32 %v2222_v18, %v3142_v26  ;;  %v395_v12 = vpop.f32.mrb[33].mxu0  ;;  %v786_v57 = vadd.f32 %v3142_v26, %v3081_v61  ;;  %v985_v51 = vmax.f32 %v791_v55, 0.0  ;;  %v796_v61 = vadd.f32 %v3142_v26, %v3089_v1 }
 0x139   :  { %v396_v10 = vadd.f32 %v3142_v26, %v395_v12  ;;  %v972_v12 = vmax.f32 %v726_v29, 0.0  ;;  %v974_v29 = vmax.f32 %v736_v37, 0.0  ;;  %v976_v37 = vmax.f32 %v746_v41, 0.0 }
 0x13a   :  { %v907_v31 = vmax.f32 %v401_v16, 0.0  ;;  %v978_v41 = vmax.f32 %v756_v45, 0.0  ;;  %v980_v45 = vmax.f32 %v766_v49, 0.0  ;;  %v982_v49 = vmax.f32 %v776_v53, 0.0 }
 0x13b   :  { %v906_v6 = vmax.f32 %v396_v10, 0.0  ;;  %v2225_v4 = vpop.f32.mrb[34].mxu0  ;;  %v984_v53 = vmax.f32 %v786_v57, 0.0  ;;  %v987_v55 = vmax.f32 %v801_v59, 0.0  ;;  %v986_v57 = vmax.f32 %v796_v61, 0.0 }
 0x13c   :  { %v3162_v2 = vsub.f32 %v907_v31, %v971_v14  ;;  %v411_v33 = vadd.f32 %v2225_v4, %v3142_v26  ;;  %v405_v18 = vpop.f32.mrb[35].mxu0  ;;  %v806_v1 = vadd.f32 %v3142_v26, %v3097_v5  ;;  %v989_v59 = vmax.f32 %v811_v63, 0.0 }
 0x13d   :  { %v3167_v62 = vsub.f32 %v906_v6, %v970_v8  ;;  %v406_v35 = vadd.f32 %v3142_v26, %v405_v18  ;;  %v816_v5 = vadd.f32 %v3142_v26, %v3105_v9  ;;  %v991_v63 = vmax.f32 %v821_v3, 0.0 }
 0x13e   :  { %v909_v16 = vmax.f32 %v411_v33, 0.0  ;;  %v988_v61 = vmax.f32 %v806_v1, 0.0  ;;  %v831_v7 = vadd.f32 %v3109_v11, %v3142_v26  ;;  %v826_v9 = vadd.f32 %v3142_v26, %v3113_v13 }
 0x13f   :  { %v908_v10 = vmax.f32 %v406_v35, 0.0  ;;  %v2228_v24 = vpop.f32.mrb[36].mxu0  ;;  %v990_v1 = vmax.f32 %v816_v5, 0.0  ;;  %v841_v11 = vadd.f32 %v3117_v15, %v3142_v26  ;;  %v836_v13 = vadd.f32 %v3142_v26, %v3121_v17 }
 0x140   :  { %v3172_v14 = vsub.f32 %v909_v16, %v973_v0  ;;  %v421_v4 = vadd.f32 %v2228_v24, %v3142_v26  ;;  %v415_v31 = vpop.f32.mrb[37].mxu0  ;;  %v993_v3 = vmax.f32 %v831_v7, 0.0  ;;  %v992_v5 = vmax.f32 %v826_v9, 0.0 }
 0x141   :  { %v3177_v6 = vsub.f32 %v908_v10, %v972_v12  ;;  %v416_v8 = vadd.f32 %v3142_v26, %v415_v31  ;;  %v995_v7 = vmax.f32 %v841_v11, 0.0  ;;  %v851_v15 = vadd.f32 %v3125_v19, %v3142_v26 }
 0x142   :  { %v911_v33 = vmax.f32 %v421_v4, 0.0  ;;  %v994_v9 = vmax.f32 %v836_v13, 0.0  ;;  %v846_v17 = vadd.f32 %v3142_v26, %v3129_v21  ;;  %v861_v19 = vadd.f32 %v3133_v23, %v3142_v26 }
 0x143   :  { %v910_v18 = vmax.f32 %v416_v8, 0.0  ;;  %v2231_v35 = vpop.f32.mrb[38].mxu0  ;;  %v997_v11 = vmax.f32 %v851_v15, 0.0  ;;  %v856_v21 = vadd.f32 %v3142_v26, %v3137_v25  ;;  %v871_v23 = vadd.f32 %v3146_v28, %v3142_v26 }
 0x144   :  { %v3182_v0 = vsub.f32 %v911_v33, %v975_v27  ;;  %v431_v16 = vadd.f32 %v2231_v35, %v3142_v26  ;;  %v425_v24 = vpop.f32.mrb[39].mxu0  ;;  %v996_v13 = vmax.f32 %v846_v17, 0.0  ;;  %v999_v15 = vmax.f32 %v861_v19, 0.0 }
 0x145   :  { %v3187_v12 = vsub.f32 %v910_v18, %v974_v29  ;;  %v426_v10 = vadd.f32 %v3142_v26, %v425_v24  ;;  %v998_v17 = vmax.f32 %v856_v21, 0.0  ;;  %v866_v25 = vadd.f32 %v3142_v26, %v3152_v20 }
 0x146   :  { %v913_v4 = vmax.f32 %v431_v16, 0.0  ;;  %v1001_v19 = vmax.f32 %v871_v23, 0.0  ;;  %v241_v21 = vadd.f32 %v3019_v30, %v3142_v26  ;;  %v236_v20 = vadd.f32 %v3142_v26, %v3023_v32 }
 0x147   :  { %v912_v31 = vmax.f32 %v426_v10, 0.0  ;;  %v2234_v8 = vpop.f32.mrb[40].mxu0  ;;  %v246_v32 = vadd.f32 %v3142_v26, %v3031_v36 }
 0x148   :  { %v3192_v27 = vsub.f32 %v913_v4, %v977_v22  ;;  %v441_v33 = vadd.f32 %v2234_v8, %v3142_v26  ;;  %v435_v35 = vpop.f32.mrb[41].mxu0 }
 0x149   :  { %v3197_v29 = vsub.f32 %v912_v31, %v976_v37  ;;  %v436_v18 = vadd.f32 %v3142_v26, %v435_v35 }
 0x14a   :  { %v915_v16 = vmax.f32 %v441_v33, 0.0 }
 0x14b   :  { %v914_v24 = vmax.f32 %v436_v18, 0.0  ;;  %v2237_v10 = vpop.f32.mrb[42].mxu0 }
 0x14c   :  { %v3202_v22 = vsub.f32 %v915_v16, %v979_v39  ;;  %v451_v4 = vadd.f32 %v2237_v10, %v3142_v26  ;;  %v445_v8 = vpop.f32.mrb[43].mxu0 }
 0x14d   :  { %v3207_v37 = vsub.f32 %v914_v24, %v978_v41  ;;  %v446_v31 = vadd.f32 %v3142_v26, %v445_v8 }
 0x14e   :  { %v917_v33 = vmax.f32 %v451_v4, 0.0 }
 0x14f   :  { %v916_v35 = vmax.f32 %v446_v31, 0.0  ;;  %v2240_v18 = vpop.f32.mrb[44].mxu0 }
 0x150   :  { %v3212_v39 = vsub.f32 %v917_v33, %v981_v43  ;;  %v461_v16 = vadd.f32 %v2240_v18, %v3142_v26  ;;  %v455_v10 = vpop.f32.mrb[45].mxu0 }
 0x151   :  { %v3217_v41 = vsub.f32 %v916_v35, %v980_v45  ;;  %v456_v24 = vadd.f32 %v3142_v26, %v455_v10 }
 0x152   :  { %v919_v4 = vmax.f32 %v461_v16, 0.0 }
 0x153   :  { %v918_v8 = vmax.f32 %v456_v24, 0.0  ;;  %v2243_v31 = vpop.f32.mrb[46].mxu0 }
 0x154   :  { %v3222_v43 = vsub.f32 %v919_v4, %v983_v47  ;;  %v471_v33 = vadd.f32 %v2243_v31, %v3142_v26  ;;  %v465_v18 = vpop.f32.mrb[47].mxu0 }
 0x155   :  { %v3227_v45 = vsub.f32 %v918_v8, %v982_v49  ;;  %v466_v35 = vadd.f32 %v3142_v26, %v465_v18 }
 0x156   :  { %v921_v16 = vmax.f32 %v471_v33, 0.0 }
 0x157   :  { %v920_v10 = vmax.f32 %v466_v35, 0.0  ;;  %v2246_v24 = vpop.f32.mrb[48].mxu0 }
 0x158   :  { %v3232_v47 = vsub.f32 %v921_v16, %v985_v51  ;;  %v481_v4 = vadd.f32 %v2246_v24, %v3142_v26  ;;  %v475_v31 = vpop.f32.mrb[49].mxu0 }
 0x159   :  { %v3237_v49 = vsub.f32 %v920_v10, %v984_v53  ;;  %v476_v8 = vadd.f32 %v3142_v26, %v475_v31 }
 0x15a   :  { %v923_v33 = vmax.f32 %v481_v4, 0.0 }
 0x15b   :  { %v922_v18 = vmax.f32 %v476_v8, 0.0  ;;  %v2249_v35 = vpop.f32.mrb[50].mxu0 }
 0x15c   :  { %v3242_v51 = vsub.f32 %v923_v33, %v987_v55  ;;  %v491_v16 = vadd.f32 %v2249_v35, %v3142_v26  ;;  %v485_v24 = vpop.f32.mrb[51].mxu0 }
 0x15d   :  { %v3247_v53 = vsub.f32 %v922_v18, %v986_v57  ;;  %v486_v10 = vadd.f32 %v3142_v26, %v485_v24 }
 0x15e   :  { %v925_v4 = vmax.f32 %v491_v16, 0.0 }
 0x15f   :  { %v924_v31 = vmax.f32 %v486_v10, 0.0  ;;  %v2252_v8 = vpop.f32.mrb[52].mxu0 }
 0x160   :  { %v3252_v55 = vsub.f32 %v925_v4, %v989_v59  ;;  %v501_v33 = vadd.f32 %v2252_v8, %v3142_v26  ;;  %v495_v35 = vpop.f32.mrb[53].mxu0 }
 0x161   :  { %v3257_v57 = vsub.f32 %v924_v31, %v988_v61  ;;  %v496_v18 = vadd.f32 %v3142_v26, %v495_v35 }
 0x162   :  { %v927_v16 = vmax.f32 %v501_v33, 0.0 }
 0x163   :  { %v926_v24 = vmax.f32 %v496_v18, 0.0  ;;  %v2255_v10 = vpop.f32.mrb[54].mxu0 }
 0x164   :  { %v3262_v59 = vsub.f32 %v927_v16, %v991_v63  ;;  %v511_v4 = vadd.f32 %v2255_v10, %v3142_v26  ;;  %v505_v8 = vpop.f32.mrb[55].mxu0 }
 0x165   :  { %v3267_v61 = vsub.f32 %v926_v24, %v990_v1  ;;  %v506_v31 = vadd.f32 %v3142_v26, %v505_v8 }
 0x166   :  { %v929_v33 = vmax.f32 %v511_v4, 0.0 }
 0x167   :  { %v928_v35 = vmax.f32 %v506_v31, 0.0  ;;  %v2258_v18 = vpop.f32.mrb[56].mxu0 }
 0x168   :  { %v3272_v63 = vsub.f32 %v929_v33, %v993_v3  ;;  %v521_v16 = vadd.f32 %v2258_v18, %v3142_v26  ;;  %v515_v10 = vpop.f32.mrb[57].mxu0 }
 0x169   :  { %v3277_v1 = vsub.f32 %v928_v35, %v992_v5  ;;  %v516_v24 = vadd.f32 %v3142_v26, %v515_v10 }
 0x16a   :  { %v931_v4 = vmax.f32 %v521_v16, 0.0 }
 0x16b   :  { %v930_v8 = vmax.f32 %v516_v24, 0.0  ;;  %v2261_v31 = vpop.f32.mrb[58].mxu0 }
 0x16c   :  { %v3282_v3 = vsub.f32 %v931_v4, %v995_v7  ;;  %v531_v33 = vadd.f32 %v2261_v31, %v3142_v26  ;;  %v525_v18 = vpop.f32.mrb[59].mxu0 }
 0x16d   :  { %v3287_v5 = vsub.f32 %v930_v8, %v994_v9  ;;  %v526_v35 = vadd.f32 %v3142_v26, %v525_v18 }
 0x16e   :  { %v933_v16 = vmax.f32 %v531_v33, 0.0 }
 0x16f   :  { %v932_v10 = vmax.f32 %v526_v35, 0.0  ;;  %v2264_v24 = vpop.f32.mrb[60].mxu0 }
 0x170   :  { %v3292_v7 = vsub.f32 %v933_v16, %v997_v11  ;;  %v541_v4 = vadd.f32 %v2264_v24, %v3142_v26  ;;  %v535_v31 = vpop.f32.mrb[61].mxu0 }
 0x171   :  { %v3297_v9 = vsub.f32 %v932_v10, %v996_v13  ;;  %v536_v8 = vadd.f32 %v3142_v26, %v535_v31  ;;  %v1000_v13 = vmax.f32 %v866_v25, 0.0  ;;  %v251_v25 = vadd.f32 %v3027_v34, %v3142_v26 }
 0x172   :  { %3601 = vst [vmem:[#allocation21_spill] sm:$0xff] %v3292_v7  ;;  %v935_v33 = vmax.f32 %v541_v4, 0.0 }
 0x173   :  { %v934_v18 = vmax.f32 %v536_v8, 0.0  ;;  %v2267_v35 = vpop.f32.mrb[62].mxu0 }
 0x174   :  { %v3302_v11 = vsub.f32 %v935_v33, %v999_v15  ;;  %v551_v16 = vadd.f32 %v2267_v35, %v3142_v26  ;;  %v545_v24 = vpop.f32.mrb[63].mxu0  ;;  %v874_v35 = vmax.f32 %v236_v20, 0.0  ;;  %v256_v20 = vadd.f32 %v3142_v26, %v3039_v40 }
 0x175   :  { %v3305_v7 = vsub.f32 %v934_v18, %v998_v17  ;;  %v546_v28 = vadd.f32 %v3142_v26, %v545_v24  ;;  %v875_v18 = vmax.f32 %v241_v21, 0.0  ;;  %v261_v21 = vadd.f32 %v3035_v38, %v3142_v26 }
 0x176   :  { %v937_v10 = vmax.f32 %v551_v16, 0.0  ;;  %v271_v38 = vadd.f32 %v3043_v42, %v3142_v26  ;;  %v266_v40 = vadd.f32 %v3142_v26, %v3047_v44  ;;  %v281_v42 = vadd.f32 %v3051_v46, %v3142_v26 }
 0x177   :  { %v936_v4 = vmax.f32 %v546_v28, 0.0  ;;  %v2270_v31 = vpop.f32.mrb[64].mxu0  ;;  %v276_v44 = vadd.f32 %v3142_v26, %v3055_v48  ;;  %v291_v46 = vadd.f32 %v3059_v50, %v3142_v26  ;;  %v286_v48 = vadd.f32 %v3142_v26, %v3063_v52 }
 0x178   :  { %v3312_v15 = vsub.f32 %v937_v10, %v1001_v19  ;;  %v561_v8 = vadd.f32 %v2270_v31, %v3142_v26  ;;  %v555_v23 = vpop.f32.mrb[65].mxu0  ;;  %v877_v31 = vmax.f32 %v251_v25, 0.0  ;;  %v301_v50 = vadd.f32 %v3067_v54, %v3142_v26 }
 0x179   :  { %v3315_v33 = vsub.f32 %v936_v4, %v1000_v13  ;;  %v556_v17 = vadd.f32 %v3142_v26, %v555_v23  ;;  %v296_v52 = vadd.f32 %v3142_v26, %v3071_v56  ;;  %v311_v54 = vadd.f32 %v3075_v58, %v3142_v26  ;;  %v3602_v58 = vld [vmem:[#allocation5_spill] sm:$0xff] }
 0x17a   :  { %v939_v30 = vmax.f32 %v561_v8, 0.0  ;;  %v876_v8 = vmax.f32 %v246_v32, 0.0  ;;  %v306_v56 = vadd.f32 %v3142_v26, %v3079_v60  ;;  %v3603_v60 = vld [vmem:[#allocation6_spill] sm:$0xff] }
 0x17b   :  { %v938_v16 = vmax.f32 %v556_v17, 0.0  ;;  %v2273_v24 = vpop.f32.mrb[66].mxu0 }
 0x17c   :  { %v1003_v19 = vsub.f32 %v875_v18, %v939_v30  ;;  %v571_v28 = vadd.f32 %v2273_v24, %v3142_v26  ;;  %v565_v10 = vpop.f32.mrb[67].mxu0  ;;  %v878_v24 = vmax.f32 %v256_v20, 0.0  ;;  %v880_v20 = vmax.f32 %v266_v40, 0.0 }
 0x17d   :  { %v1002_v13 = vsub.f32 %v874_v35, %v938_v16  ;;  %v566_v4 = vadd.f32 %v3142_v26, %v565_v10  ;;  %v879_v16 = vmax.f32 %v261_v21, 0.0 }
 0x17e   :  { %v941_v34 = vmax.f32 %v571_v28, 0.0 }
 0x17f   :  { %v940_v36 = vmax.f32 %v566_v4, 0.0  ;;  %v2276_v23 = vpop.f32.mrb[68].mxu0  ;;  %2372 = vmatprep.mubr.msk.f32.mxu1 %vm1070_vm0, %v1002_v13 }
 0x180   :  { %v1005_v17 = vsub.f32 %v877_v31, %v941_v34  ;;  %v581_v18 = vadd.f32 %v2276_v23, %v3142_v26  ;;  %v575_v30 = vpop.f32.mrb[69].mxu0  ;;  %2373 = vmatmul.mubr.msk.f32.vlgmr.msra.gmra.mrb[32].mxu1 %vm1070_vm0, %v1003_v19  ;;  %v881_v34 = vmax.f32 %v271_v38, 0.0 }
 0x181   :  { %v1004_v35 = vsub.f32 %v876_v8, %v940_v36  ;;  %v576_v25 = vadd.f32 %v3142_v26, %v575_v30 }
 0x182   :  { %v943_v32 = vmax.f32 %v581_v18, 0.0 }
 0x183   :  { %v942_v28 = vmax.f32 %v576_v25, 0.0  ;;  %v2279_v10 = vpop.f32.mrb[70].mxu0  ;;  %2375 = vmatprep.mubr.msk.f32.mxu1 %vm1070_vm0, %v1004_v35 }
 0x184   :  { %v1007_v13 = vsub.f32 %v879_v16, %v943_v32  ;;  %v591_v4 = vadd.f32 %v2279_v10, %v3142_v26  ;;  %v585_v19 = vpop.f32.mrb[71].mxu0  ;;  %2376 = vmatmul.mubr.msk.f32.gmra.mrb[34].mxu1 %vm1070_vm0, %v1005_v17  ;;  %v883_v16 = vmax.f32 %v281_v42, 0.0  ;;  %v882_v32 = vmax.f32 %v276_v44, 0.0 }
 0x185   :  { %v1006_v31 = vsub.f32 %v878_v24, %v942_v28  ;;  %v586_v21 = vadd.f32 %v3142_v26, %v585_v19 }
 0x186   :  { %v945_v8 = vmax.f32 %v591_v4, 0.0 }
 0x187   :  { %v944_v36 = vmax.f32 %v586_v21, 0.0  ;;  %v2282_v23 = vpop.f32.mrb[72].mxu0  ;;  %2378 = vmatprep.mubr.msk.f32.mxu1 %vm1070_vm0, %v1006_v31  ;;  %v885_v31 = vmax.f32 %v291_v46, 0.0 }
 0x188   :  { %v1009_v18 = vsub.f32 %v881_v34, %v945_v8  ;;  %v601_v30 = vadd.f32 %v2282_v23, %v3142_v26  ;;  %v595_v17 = vpop.f32.mrb[73].mxu0  ;;  %2379 = vmatmul.mubr.msk.f32.gmra.mrb[36].mxu1 %vm1070_vm0, %v1007_v13  ;;  %v884_v34 = vmax.f32 %v286_v48, 0.0 }
 0x189   :  { %v1008_v35 = vsub.f32 %v880_v20, %v944_v36  ;;  %v596_v25 = vadd.f32 %v3142_v26, %v595_v17 }
 0x18a   :  { %v947_v38 = vmax.f32 %v601_v30, 0.0  ;;  %v887_v30 = vmax.f32 %v301_v50, 0.0 }
 0x18b   :  { %v946_v24 = vmax.f32 %v596_v25, 0.0  ;;  %v2285_v40 = vpop.f32.mrb[74].mxu0  ;;  %2381 = vmatprep.mubr.msk.f32.mxu1 %vm1070_vm0, %v1008_v35  ;;  %v886_v35 = vmax.f32 %v296_v52, 0.0 }
 0x18c   :  { %v1011_v28 = vsub.f32 %v883_v16, %v947_v38  ;;  %v611_v10 = vadd.f32 %v2285_v40, %v3142_v26  ;;  %v605_v13 = vpop.f32.mrb[75].mxu0  ;;  %2382 = vmatmul.mubr.msk.f32.gmra.mrb[38].mxu1 %vm1070_vm0, %v1009_v18  ;;  %v889_v40 = vmax.f32 %v311_v54, 0.0 }
 0x18d   :  { %v1010_v4 = vsub.f32 %v882_v32, %v946_v24  ;;  %v606_v19 = vadd.f32 %v3142_v26, %v605_v13  ;;  %v888_v13 = vmax.f32 %v306_v56, 0.0 }
 0x18e   :  { %v949_v21 = vmax.f32 %v611_v10, 0.0 }
 0x18f   :  { %v948_v42 = vmax.f32 %v606_v19, 0.0  ;;  %v2288_v8 = vpop.f32.mrb[76].mxu0  ;;  %2384 = vmatprep.mubr.msk.f32.mxu1 %vm1070_vm0, %v1010_v4  ;;  %v316_v4 = vadd.f32 %v3142_v26, %v3603_v60 }
 0x190   :  { %v1013_v20 = vsub.f32 %v885_v31, %v949_v21  ;;  %v621_v44 = vadd.f32 %v2288_v8, %v3142_v26  ;;  %v615_v36 = vpop.f32.mrb[77].mxu0  ;;  %2385 = vmatmul.mubr.msk.f32.gmra.mrb[40].mxu1 %vm1070_vm0, %v1011_v28  ;;  %v321_v28 = vadd.f32 %v3602_v58, %v3142_v26  ;;  %v3607_v58 = vld [vmem:[#allocation10_spill] sm:$0xff] }
 0x191   :  { %v1012_v23 = vsub.f32 %v884_v34, %v948_v42  ;;  %v616_v18 = vadd.f32 %v3142_v26, %v615_v36 }
 0x192   :  { %v951_v17 = vmax.f32 %v621_v44, 0.0  ;;  %v891_v8 = vmax.f32 %v321_v28, 0.0  ;;  %v336_v28 = vadd.f32 %v3142_v26, %v3607_v58 }
 0x193   :  { %v950_v25 = vmax.f32 %v616_v18, 0.0  ;;  %v2291_v16 = vpop.f32.mrb[78].mxu0  ;;  %2387 = vmatprep.mubr.msk.f32.mxu1 %vm1070_vm0, %v1012_v23  ;;  %v890_v23 = vmax.f32 %v316_v4, 0.0  ;;  %v3605_v18 = vld [vmem:[#allocation8_spill] sm:$0xff] }
 0x194   :  { %v1015_v46 = vsub.f32 %v887_v30, %v951_v17  ;;  %v631_v38 = vadd.f32 %v2291_v16, %v3142_v26  ;;  %v625_v32 = vpop.f32.mrb[79].mxu0  ;;  %2388 = vmatmul.mubr.msk.f32.gmra.mrb[42].mxu1 %vm1070_vm0, %v1013_v20  ;;  %v3604_v20 = vld [vmem:[#allocation7_spill] sm:$0xff]  ;;  %v326_v30 = vadd.f32 %v3142_v26, %v3605_v18 }
 0x195   :  { %v1014_v48 = vsub.f32 %v886_v35, %v950_v25  ;;  %v626_v24 = vadd.f32 %v3142_v26, %v625_v32  ;;  %v331_v44 = vadd.f32 %v3604_v20, %v3142_v26  ;;  %v3606_v32 = vld [vmem:[#allocation9_spill] sm:$0xff]  ;;  %v3609_v20 = vld [vmem:[#allocation12_spill] sm:$0xff] }
 0x196   :  { %v953_v10 = vmax.f32 %v631_v38, 0.0 }
 0x197   :  { %v952_v19 = vmax.f32 %v626_v24, 0.0  ;;  %v2294_v31 = vpop.f32.mrb[80].mxu0  ;;  %2390 = vmatprep.mubr.msk.f32.mxu1 %vm1070_vm0, %v1014_v48  ;;  %v893_v38 = vmax.f32 %v331_v44, 0.0  ;;  %v341_v48 = vadd.f32 %v3606_v32, %v3142_v26  ;;  %v346_v44 = vadd.f32 %v3142_v26, %v3609_v20  ;;  %v3611_v32 = vld [vmem:[#allocation14_spill] sm:$0xff] }
 0x198   :  { %v1017_v50 = vsub.f32 %v889_v40, %v953_v10  ;;  %v641_v21 = vadd.f32 %v2294_v31, %v3142_v26  ;;  %v635_v34 = vpop.f32.mrb[81].mxu0  ;;  %2391 = vmatmul.mubr.msk.f32.gmra.mrb[44].mxu1 %vm1070_vm0, %v1015_v46  ;;  %v892_v40 = vmax.f32 %v326_v30, 0.0 }
 0x199   :  { %v1016_v52 = vsub.f32 %v888_v13, %v952_v19  ;;  %v636_v42 = vadd.f32 %v3142_v26, %v635_v34  ;;  %v3608_v34 = vld [vmem:[#allocation11_spill] sm:$0xff] }
 0x19a   :  { %v955_v36 = vmax.f32 %v641_v21, 0.0  ;;  %v895_v21 = vmax.f32 %v341_v48, 0.0  ;;  %v356_v48 = vadd.f32 %v3142_v26, %v3611_v32 }
 0x19b   :  { %v954_v54 = vmax.f32 %v636_v42, 0.0  ;;  %v2297_v17 = vpop.f32.mrb[82].mxu0  ;;  %2393 = vmatprep.mubr.msk.f32.mxu1 %vm1070_vm0, %v1016_v52  ;;  %v351_v52 = vadd.f32 %v3608_v34, %v3142_v26  ;;  %v3613_v34 = vld [vmem:[#allocation16_spill] sm:$0xff] }
 0x19c   :  { %v1019_v35 = vsub.f32 %v891_v8, %v955_v36  ;;  %v651_v56 = vadd.f32 %v2297_v17, %v3142_v26  ;;  %v645_v25 = vpop.f32.mrb[83].mxu0  ;;  %2394 = vmatmul.mubr.msk.f32.gmra.mrb[46].mxu1 %vm1070_vm0, %v1017_v50  ;;  %v894_v8 = vmax.f32 %v336_v28, 0.0 }
 0x19d   :  { %v1018_v16 = vsub.f32 %v890_v23, %v954_v54  ;;  %v646_v46 = vadd.f32 %v3142_v26, %v645_v25  ;;  %v3610_v25 = vld [vmem:[#allocation13_spill] sm:$0xff] }
 0x19e   :  { %v957_v24 = vmax.f32 %v651_v56, 0.0  ;;  %v897_v56 = vmax.f32 %v351_v52, 0.0  ;;  %v366_v52 = vadd.f32 %v3142_v26, %v3613_v34 }
 0x19f   :  { %v956_v10 = vmax.f32 %v646_v46, 0.0  ;;  %v2300_v13 = vpop.f32.mrb[84].mxu0  ;;  %2396 = vmatprep.mubr.msk.f32.mxu1 %vm1070_vm0, %v1018_v16  ;;  %v361_v16 = vadd.f32 %v3610_v25, %v3142_v26  ;;  %v3615_v25 = vld [vmem:[#allocation18_spill] sm:$0xff] }
 0x1a0   :  { %v1021_v60 = vsub.f32 %v893_v38, %v957_v24  ;;  %v661_v4 = vadd.f32 %v2300_v13, %v3142_v26  ;;  %v655_v19 = vpop.f32.mrb[85].mxu0  ;;  %2397 = vmatmul.mubr.msk.f32.gmra.mrb[48].mxu1 %vm1070_vm0, %v1019_v35  ;;  %v896_v38 = vmax.f32 %v346_v44, 0.0 }
 0x1a1   :  { %v1020_v31 = vsub.f32 %v892_v40, %v956_v10  ;;  %v656_v50 = vadd.f32 %v3142_v26, %v655_v19  ;;  %v3612_v19 = vld [vmem:[#allocation15_spill] sm:$0xff] }
 0x1a2   :  { %v959_v42 = vmax.f32 %v661_v4, 0.0  ;;  %v899_v4 = vmax.f32 %v361_v16, 0.0  ;;  %v376_v16 = vadd.f32 %v3142_v26, %v3615_v25 }
 0x1a3   :  { %v958_v36 = vmax.f32 %v656_v50, 0.0  ;;  %v2303_v23 = vpop.f32.mrb[86].mxu0  ;;  %2399 = vmatprep.mubr.msk.f32.mxu1 %vm1070_vm0, %v1020_v31  ;;  %v371_v31 = vadd.f32 %v3612_v19, %v3142_v26  ;;  %v3617_v19 = vld [vmem:[#allocation20_spill] sm:$0xff] }
 0x1a4   :  { %v1023_v18 = vsub.f32 %v895_v21, %v959_v42  ;;  %v671_v30 = vadd.f32 %v2303_v23, %v3142_v26  ;;  %v665_v54 = vpop.f32.mrb[87].mxu0  ;;  %2400 = vmatmul.mubr.msk.f32.gmra.mrb[50].mxu1 %vm1070_vm0, %v1021_v60  ;;  %v898_v21 = vmax.f32 %v356_v48, 0.0 }
 0x1a5   :  { %v1022_v17 = vsub.f32 %v894_v8, %v958_v36  ;;  %v666_v35 = vadd.f32 %v3142_v26, %v665_v54  ;;  %v3614_v54 = vld [vmem:[#allocation17_spill] sm:$0xff] }
 0x1a6   :  { %v961_v46 = vmax.f32 %v671_v30, 0.0  ;;  %v901_v30 = vmax.f32 %v371_v31, 0.0  ;;  %v386_v31 = vadd.f32 %v3142_v26, %v3617_v19 }
 0x1a7   :  { %v960_v24 = vmax.f32 %v666_v35, 0.0  ;;  %v2306_v40 = vpop.f32.mrb[88].mxu0  ;;  %2402 = vmatprep.mubr.msk.f32.mxu1 %vm1070_vm0, %v1022_v17  ;;  %v381_v17 = vadd.f32 %v3614_v54, %v3142_v26 }
 0x1a8   :  { %v1025_v58 = vsub.f32 %v897_v56, %v961_v46  ;;  %v681_v28 = vadd.f32 %v2306_v40, %v3142_v26  ;;  %v675_v10 = vpop.f32.mrb[89].mxu0  ;;  %2403 = vmatmul.mubr.msk.f32.gmra.mrb[52].mxu1 %vm1070_vm0, %v1023_v18  ;;  %v900_v56 = vmax.f32 %v366_v52, 0.0 }
 0x1a9   :  { %v1024_v13 = vsub.f32 %v896_v38, %v960_v24  ;;  %v676_v60 = vadd.f32 %v3142_v26, %v675_v10  ;;  %v3616_v10 = vld [vmem:[#allocation19_spill] sm:$0xff] }
 0x1aa   :  { %v963_v50 = vmax.f32 %v681_v28, 0.0  ;;  %v903_v28 = vmax.f32 %v381_v17, 0.0 }
 0x1ab   :  { %v962_v42 = vmax.f32 %v676_v60, 0.0  ;;  %v2309_v8 = vpop.f32.mrb[90].mxu0  ;;  %2405 = vmatprep.mubr.msk.f32.mxu1 %vm1070_vm0, %v1024_v13  ;;  %v391_v13 = vadd.f32 %v3616_v10, %v3142_v26 }
 0x1ac   :  { %v1027_v20 = vsub.f32 %v899_v4, %v963_v50  ;;  %v691_v44 = vadd.f32 %v2309_v8, %v3142_v26  ;;  %v685_v36 = vpop.f32.mrb[91].mxu0  ;;  %2406 = vmatmul.mubr.msk.f32.gmra.mrb[54].mxu1 %vm1070_vm0, %v1025_v58  ;;  %v902_v4 = vmax.f32 %v376_v16, 0.0 }
 0x1ad   :  { %v1026_v23 = vsub.f32 %v898_v21, %v962_v42  ;;  %v686_v18 = vadd.f32 %v3142_v26, %v685_v36 }
 0x1ae   :  { %v965_v35 = vmax.f32 %v691_v44, 0.0  ;;  %v905_v44 = vmax.f32 %v391_v13, 0.0 }
 0x1af   :  { %v964_v46 = vmax.f32 %v686_v18, 0.0  ;;  %v2312_v38 = vpop.f32.mrb[92].mxu0  ;;  %2408 = vmatprep.mubr.msk.f32.mxu1 %vm1070_vm0, %v1026_v23  ;;  %v904_v23 = vmax.f32 %v386_v31, 0.0 }
 0x1b0   :  { %v1029_v32 = vsub.f32 %v901_v30, %v965_v35  ;;  %v701_v48 = vadd.f32 %v2312_v38, %v3142_v26  ;;  %v695_v24 = vpop.f32.mrb[93].mxu0  ;;  %2409 = vmatmul.mubr.msk.f32.gmra.mrb[56].mxu1 %vm1070_vm0, %v1027_v20 }
 0x1b1   :  { %v1028_v40 = vsub.f32 %v900_v56, %v964_v46  ;;  %v696_v58 = vadd.f32 %v3142_v26, %v695_v24 }
 0x1b2   :  { %v967_v60 = vmax.f32 %v701_v48, 0.0 }
 0x1b3   :  { %v966_v50 = vmax.f32 %v696_v58, 0.0  ;;  %v2315_v21 = vpop.f32.mrb[94].mxu0  ;;  %2411 = vmatprep.mubr.msk.f32.mxu1 %vm1070_vm0, %v1028_v40 }
 0x1b4   :  { %v1031_v34 = vsub.f32 %v903_v28, %v967_v60  ;;  %v711_v52 = vadd.f32 %v2315_v21, %v3142_v26  ;;  %v705_v42 = vpop.f32.mrb[95].mxu0  ;;  %2412 = vmatmul.mubr.msk.f32.gmra.mrb[58].mxu1 %vm1070_vm0, %v1029_v32 }
 0x1b5   :  { %v1030_v8 = vsub.f32 %v902_v4, %v966_v50  ;;  %v706_v20 = vadd.f32 %v3142_v26, %v705_v42 }
 0x1b6   :  { %v969_v36 = vmax.f32 %v711_v52, 0.0 }
 0x1b7   :  { %v968_v18 = vmax.f32 %v706_v20, 0.0  ;;  %2414 = vmatprep.mubr.msk.f32.mxu1 %vm1070_vm0, %v1030_v8 }
 0x1b8   :  { %v1033_v30 = vsub.f32 %v905_v44, %v969_v36  ;;  %2415 = vmatmul.mubr.msk.f32.gmra.mrb[60].mxu1 %vm1070_vm0, %v1031_v34 }
 0x1b9   :  { %v1032_v54 = vsub.f32 %v904_v23, %v968_v18 }
 0x1bb   :  { %2417 = vmatprep.mubr.msk.f32.mxu1 %vm1070_vm0, %v1032_v54 }
 0x1bc   :  { %2418 = vmatmul.mubr.msk.f32.gmra.mrb[62].mxu1 %vm1070_vm0, %v1033_v30 }
 0x1bd   :  { %2420 = vmatprep.mubr.msk.f32.mxu1 %vm1070_vm0, %v3167_v62  ;;  %v3618_v62 = vld [vmem:[#allocation21_spill] sm:$0xff] }
 0x1c0   :  { %2421 = vmatmul.mubr.msk.f32.gmra.mrb[64].mxu1 %vm1070_vm0, %v3162_v2 }
 0x1c1   :  { %2423 = vmatprep.mubr.msk.f32.mxu1 %vm1070_vm0, %v3177_v6 }
 0x1c4   :  { %2424 = vmatmul.mubr.msk.f32.gmra.mrb[66].mxu1 %vm1070_vm0, %v3172_v14 }
 0x1c5   :  { %2426 = vmatprep.mubr.msk.f32.mxu1 %vm1070_vm0, %v3187_v12 }
 0x1c8   :  { %2427 = vmatmul.mubr.msk.f32.gmra.mrb[68].mxu1 %vm1070_vm0, %v3182_v0 }
 0x1c9   :  { %2429 = vmatprep.mubr.msk.f32.mxu1 %vm1070_vm0, %v3197_v29 }
 0x1cc   :  { %2430 = vmatmul.mubr.msk.f32.gmra.mrb[70].mxu1 %vm1070_vm0, %v3192_v27 }
 0x1cd   :  { %2432 = vmatprep.mubr.msk.f32.mxu1 %vm1070_vm0, %v3207_v37 }
 0x1d0   :  { %2433 = vmatmul.mubr.msk.f32.gmra.mrb[72].mxu1 %vm1070_vm0, %v3202_v22 }
 0x1d1   :  { %2435 = vmatprep.mubr.msk.f32.mxu1 %vm1070_vm0, %v3217_v41 }
 0x1d4   :  { %2436 = vmatmul.mubr.msk.f32.gmra.mrb[74].mxu1 %vm1070_vm0, %v3212_v39 }
 0x1d5   :  { %2438 = vmatprep.mubr.msk.f32.mxu1 %vm1070_vm0, %v3227_v45 }
 0x1d8   :  { %2439 = vmatmul.mubr.msk.f32.gmra.mrb[76].mxu1 %vm1070_vm0, %v3222_v43 }
 0x1d9   :  { %2441 = vmatprep.mubr.msk.f32.mxu1 %vm1070_vm0, %v3237_v49 }
 0x1dc   :  { %2442 = vmatmul.mubr.msk.f32.gmra.mrb[78].mxu1 %vm1070_vm0, %v3232_v47 }
 0x1dd   :  { %2444 = vmatprep.mubr.msk.f32.mxu1 %vm1070_vm0, %v3247_v53 }
 0x1e0   :  { %2445 = vmatmul.mubr.msk.f32.gmra.mrb[80].mxu1 %vm1070_vm0, %v3242_v51 }
 0x1e1   :  { %2447 = vmatprep.mubr.msk.f32.mxu1 %vm1070_vm0, %v3257_v57 }
 0x1e4   :  { %2448 = vmatmul.mubr.msk.f32.gmra.mrb[82].mxu1 %vm1070_vm0, %v3252_v55 }
 0x1e5   :  { %2450 = vmatprep.mubr.msk.f32.mxu1 %vm1070_vm0, %v3267_v61 }
 0x1e8   :  { %2451 = vmatmul.mubr.msk.f32.gmra.mrb[84].mxu1 %vm1070_vm0, %v3262_v59 }
 0x1e9   :  { %2453 = vmatprep.mubr.msk.f32.mxu1 %vm1070_vm0, %v3277_v1 }
 0x1ec   :  { %2454 = vmatmul.mubr.msk.f32.gmra.mrb[86].mxu1 %vm1070_vm0, %v3272_v63 }
 0x1ed   :  { %2456 = vmatprep.mubr.msk.f32.mxu1 %vm1070_vm0, %v3287_v5 }
 0x1f0   :  { %2457 = vmatmul.mubr.msk.f32.gmra.mrb[88].mxu1 %vm1070_vm0, %v3282_v3 }
 0x1f1   :  { %2459 = vmatprep.mubr.msk.f32.mxu1 %vm1070_vm0, %v3297_v9 }
 0x1f4   :  { %2460 = vmatmul.mubr.msk.f32.gmra.mrb[90].mxu1 %vm1070_vm0, %v3618_v62 }
 0x1f5   :  { %2462 = vmatprep.mubr.msk.f32.mxu1 %vm1070_vm0, %v3305_v7 }
 0x1f8   :  { %2463 = vmatmul.mubr.msk.f32.gmra.mrb[92].mxu1 %vm1070_vm0, %v3302_v11 }
 0x1f9   :  { %2465 = vmatprep.mubr.msk.f32.mxu1 %vm1070_vm0, %v3315_v33 }
 0x1fc   :  { %2466 = vmatmul.mubr.msk.f32.gmra.mrb[94].mxu1 %vm1070_vm0, %v3312_v15 }
 0x253   :  { %v2374_v2 = vpop.f32.mrb[32].mxu1 }
 0x254   :  { %v1649_v26 = vmul.f32 %v2374_v2, %v2374_v2  ;;  %v1329_v14 = vpop.f32.mrb[33].mxu1 }
 0x255   :  { %v1648_v6 = vmul.f32 %v1329_v14, %v1329_v14 }
 0x256   :  { %v1714_v0 = vsel %vm1712_vm1, %v1649_v26, 0.0 }
 0x257   :  { %v1713_v12 = vsel %vm1712_vm1, %v1648_v6, 0.0  ;;  %v2377_v27 = vpop.f32.mrb[34].mxu1 }
 0x258   :  { %v1715_v29 = vadd.f32 %v1714_v0, %v1713_v12  ;;  %v1339_v22 = vpop.f32.mrb[35].mxu1  ;;  %v1651_v37 = vmul.f32 %v2377_v27, %v2377_v27 }
 0x259   :  { %v1650_v39 = vmul.f32 %v1339_v22, %v1339_v22 }
 0x25a   :  { %v1718_v49 = vsel %vm1712_vm1, %v1651_v37, 0.0 }
 0x25b   :  { %v1716_v41 = vsel %vm1712_vm1, %v1650_v39, 0.0  ;;  %v2380_v43 = vpop.f32.mrb[36].mxu1 }
 0x25c   :  { %v1717_v45 = vadd.f32 %v1716_v41, %v1715_v29  ;;  %v1349_v47 = vpop.f32.mrb[37].mxu1  ;;  %v1653_v51 = vmul.f32 %v2380_v43, %v2380_v43 }
 0x25d   :  { %v1652_v53 = vmul.f32 %v1349_v47, %v1349_v47 }
 0x25e   :  { %v1719_v55 = vadd.f32 %v1718_v49, %v1717_v45  ;;  %v1722_v1 = vsel %vm1712_vm1, %v1653_v51, 0.0 }
 0x25f   :  { %v1720_v57 = vsel %vm1712_vm1, %v1652_v53, 0.0  ;;  %v2383_v59 = vpop.f32.mrb[38].mxu1 }
 0x260   :  { %v1721_v61 = vadd.f32 %v1720_v57, %v1719_v55  ;;  %v1359_v63 = vpop.f32.mrb[39].mxu1  ;;  %v1655_v3 = vmul.f32 %v2383_v59, %v2383_v59 }
 0x261   :  { %v1654_v5 = vmul.f32 %v1359_v63, %v1359_v63 }
 0x262   :  { %v1723_v7 = vadd.f32 %v1722_v1, %v1721_v61  ;;  %v1726_v17 = vsel %vm1712_vm1, %v1655_v3, 0.0 }
 0x263   :  { %v1724_v9 = vsel %vm1712_vm1, %v1654_v5, 0.0  ;;  %v2386_v11 = vpop.f32.mrb[40].mxu1 }
 0x264   :  { %v1725_v15 = vadd.f32 %v1724_v9, %v1723_v7  ;;  %v1369_v33 = vpop.f32.mrb[41].mxu1  ;;  %v1657_v35 = vmul.f32 %v2386_v11, %v2386_v11 }
 0x265   :  { %v1656_v56 = vmul.f32 %v1369_v33, %v1369_v33 }
 0x266   :  { %v1727_v25 = vadd.f32 %v1726_v17, %v1725_v15  ;;  %v1730_v48 = vsel %vm1712_vm1, %v1657_v35, 0.0 }
 0x267   :  { %v1728_v16 = vsel %vm1712_vm1, %v1656_v56, 0.0  ;;  %v2389_v46 = vpop.f32.mrb[42].mxu1 }
 0x268   :  { %v1729_v38 = vadd.f32 %v1728_v16, %v1727_v25  ;;  %v1379_v32 = vpop.f32.mrb[43].mxu1  ;;  %v1659_v24 = vmul.f32 %v2389_v46, %v2389_v46 }
 0x269   :  { %v1658_v40 = vmul.f32 %v1379_v32, %v1379_v32 }
 0x26a   :  { %v1731_v58 = vadd.f32 %v1730_v48, %v1729_v38  ;;  %v1734_v4 = vsel %vm1712_vm1, %v1659_v24, 0.0 }
 0x26b   :  { %v1732_v28 = vsel %vm1712_vm1, %v1658_v40, 0.0  ;;  %v2392_v10 = vpop.f32.mrb[44].mxu1 }
 0x26c   :  { %v1733_v13 = vadd.f32 %v1732_v28, %v1731_v58  ;;  %v1389_v60 = vpop.f32.mrb[45].mxu1  ;;  %v1661_v19 = vmul.f32 %v2392_v10, %v2392_v10 }
 0x26d   :  { %v1660_v31 = vmul.f32 %v1389_v60, %v1389_v60 }
 0x26e   :  { %v1735_v50 = vadd.f32 %v1734_v4, %v1733_v13  ;;  %v1738_v8 = vsel %vm1712_vm1, %v1661_v19, 0.0 }
 0x26f   :  { %v1736_v21 = vsel %vm1712_vm1, %v1660_v31, 0.0  ;;  %v2395_v34 = vpop.f32.mrb[46].mxu1 }
 0x270   :  { %v1737_v52 = vadd.f32 %v1736_v21, %v1735_v50  ;;  %v1399_v42 = vpop.f32.mrb[47].mxu1  ;;  %v1663_v20 = vmul.f32 %v2395_v34, %v2395_v34 }
 0x271   :  { %v1662_v44 = vmul.f32 %v1399_v42, %v1399_v42 }
 0x272   :  { %v1739_v36 = vadd.f32 %v1738_v8, %v1737_v52  ;;  %v1742_v62 = vsel %vm1712_vm1, %v1663_v20, 0.0 }
 0x273   :  { %v1740_v23 = vsel %vm1712_vm1, %v1662_v44, 0.0  ;;  %v2398_v18 = vpop.f32.mrb[48].mxu1 }
 0x274   :  { %v1741_v30 = vadd.f32 %v1740_v23, %v1739_v36  ;;  %v1409_v54 = vpop.f32.mrb[49].mxu1  ;;  %v1665_v2 = vmul.f32 %v2398_v18, %v2398_v18 }
 0x275   :  { %v1664_v26 = vmul.f32 %v1409_v54, %v1409_v54 }
 0x276   :  { %v1743_v14 = vadd.f32 %v1742_v62, %v1741_v30  ;;  %v1746_v29 = vsel %vm1712_vm1, %v1665_v2, 0.0 }
 0x277   :  { %v1744_v6 = vsel %vm1712_vm1, %v1664_v26, 0.0  ;;  %v2401_v0 = vpop.f32.mrb[50].mxu1 }
 0x278   :  { %v1745_v12 = vadd.f32 %v1744_v6, %v1743_v14  ;;  %v1419_v27 = vpop.f32.mrb[51].mxu1  ;;  %v1667_v22 = vmul.f32 %v2401_v0, %v2401_v0 }
 0x279   :  { %v1666_v37 = vmul.f32 %v1419_v27, %v1419_v27 }
 0x27a   :  { %v1747_v39 = vadd.f32 %v1746_v29, %v1745_v12  ;;  %v1750_v49 = vsel %vm1712_vm1, %v1667_v22, 0.0 }
 0x27b   :  { %v1748_v41 = vsel %vm1712_vm1, %v1666_v37, 0.0  ;;  %v2404_v43 = vpop.f32.mrb[52].mxu1 }
 0x27c   :  { %v1749_v45 = vadd.f32 %v1748_v41, %v1747_v39  ;;  %v1429_v47 = vpop.f32.mrb[53].mxu1  ;;  %v1669_v51 = vmul.f32 %v2404_v43, %v2404_v43 }
 0x27d   :  { %v1668_v53 = vmul.f32 %v1429_v47, %v1429_v47 }
 0x27e   :  { %v1751_v55 = vadd.f32 %v1750_v49, %v1749_v45  ;;  %v1754_v1 = vsel %vm1712_vm1, %v1669_v51, 0.0 }
 0x27f   :  { %v1752_v57 = vsel %vm1712_vm1, %v1668_v53, 0.0  ;;  %v2407_v59 = vpop.f32.mrb[54].mxu1 }
 0x280   :  { %v1753_v61 = vadd.f32 %v1752_v57, %v1751_v55  ;;  %v1439_v63 = vpop.f32.mrb[55].mxu1  ;;  %v1671_v3 = vmul.f32 %v2407_v59, %v2407_v59 }
 0x281   :  { %v1670_v5 = vmul.f32 %v1439_v63, %v1439_v63 }
 0x282   :  { %v1755_v7 = vadd.f32 %v1754_v1, %v1753_v61  ;;  %v1758_v17 = vsel %vm1712_vm1, %v1671_v3, 0.0 }
 0x283   :  { %v1756_v9 = vsel %vm1712_vm1, %v1670_v5, 0.0  ;;  %v2410_v11 = vpop.f32.mrb[56].mxu1 }
 0x284   :  { %v1757_v15 = vadd.f32 %v1756_v9, %v1755_v7  ;;  %v1449_v33 = vpop.f32.mrb[57].mxu1  ;;  %v1673_v35 = vmul.f32 %v2410_v11, %v2410_v11 }
 0x285   :  { %v1672_v56 = vmul.f32 %v1449_v33, %v1449_v33 }
 0x286   :  { %v1759_v25 = vadd.f32 %v1758_v17, %v1757_v15  ;;  %v1762_v48 = vsel %vm1712_vm1, %v1673_v35, 0.0 }
 0x287   :  { %v1760_v16 = vsel %vm1712_vm1, %v1672_v56, 0.0  ;;  %v2413_v46 = vpop.f32.mrb[58].mxu1 }
 0x288   :  { %v1761_v38 = vadd.f32 %v1760_v16, %v1759_v25  ;;  %v1459_v32 = vpop.f32.mrb[59].mxu1  ;;  %v1675_v24 = vmul.f32 %v2413_v46, %v2413_v46 }
 0x289   :  { %v1674_v40 = vmul.f32 %v1459_v32, %v1459_v32 }
 0x28a   :  { %v1763_v58 = vadd.f32 %v1762_v48, %v1761_v38  ;;  %v1766_v4 = vsel %vm1712_vm1, %v1675_v24, 0.0 }
 0x28b   :  { %v1764_v28 = vsel %vm1712_vm1, %v1674_v40, 0.0  ;;  %v2416_v10 = vpop.f32.mrb[60].mxu1 }
 0x28c   :  { %v1765_v13 = vadd.f32 %v1764_v28, %v1763_v58  ;;  %v1469_v60 = vpop.f32.mrb[61].mxu1  ;;  %v1677_v19 = vmul.f32 %v2416_v10, %v2416_v10 }
 0x28d   :  { %v1676_v31 = vmul.f32 %v1469_v60, %v1469_v60 }
 0x28e   :  { %v1767_v50 = vadd.f32 %v1766_v4, %v1765_v13  ;;  %v1770_v8 = vsel %vm1712_vm1, %v1677_v19, 0.0 }
 0x28f   :  { %v1768_v21 = vsel %vm1712_vm1, %v1676_v31, 0.0  ;;  %v2419_v34 = vpop.f32.mrb[62].mxu1 }
 0x290   :  { %v1769_v52 = vadd.f32 %v1768_v21, %v1767_v50  ;;  %v1479_v42 = vpop.f32.mrb[63].mxu1  ;;  %v1679_v20 = vmul.f32 %v2419_v34, %v2419_v34 }
 0x291   :  { %v1678_v44 = vmul.f32 %v1479_v42, %v1479_v42 }
 0x292   :  { %v1771_v36 = vadd.f32 %v1770_v8, %v1769_v52  ;;  %v1774_v62 = vsel %vm1712_vm1, %v1679_v20, 0.0 }
 0x293   :  { %v1772_v23 = vsel %vm1712_vm1, %v1678_v44, 0.0  ;;  %v2422_v18 = vpop.f32.mrb[64].mxu1 }
 0x294   :  { %v1773_v30 = vadd.f32 %v1772_v23, %v1771_v36  ;;  %v1489_v54 = vpop.f32.mrb[65].mxu1  ;;  %v1681_v2 = vmul.f32 %v2422_v18, %v2422_v18 }
 0x295   :  { %v1680_v26 = vmul.f32 %v1489_v54, %v1489_v54 }
 0x296   :  { %v1775_v14 = vadd.f32 %v1774_v62, %v1773_v30  ;;  %v1778_v29 = vsel %vm1712_vm1, %v1681_v2, 0.0 }
 0x297   :  { %v1776_v6 = vsel %vm1712_vm1, %v1680_v26, 0.0  ;;  %v2425_v0 = vpop.f32.mrb[66].mxu1 }
 0x298   :  { %v1777_v12 = vadd.f32 %v1776_v6, %v1775_v14  ;;  %v1499_v27 = vpop.f32.mrb[67].mxu1  ;;  %v1683_v22 = vmul.f32 %v2425_v0, %v2425_v0 }
 0x299   :  { %v1682_v37 = vmul.f32 %v1499_v27, %v1499_v27 }
 0x29a   :  { %v1779_v39 = vadd.f32 %v1778_v29, %v1777_v12  ;;  %v1782_v49 = vsel %vm1712_vm1, %v1683_v22, 0.0 }
 0x29b   :  { %v1780_v41 = vsel %vm1712_vm1, %v1682_v37, 0.0  ;;  %v2428_v43 = vpop.f32.mrb[68].mxu1 }
 0x29c   :  { %v1781_v45 = vadd.f32 %v1780_v41, %v1779_v39  ;;  %v1509_v47 = vpop.f32.mrb[69].mxu1  ;;  %v1685_v51 = vmul.f32 %v2428_v43, %v2428_v43 }
 0x29d   :  { %v1684_v53 = vmul.f32 %v1509_v47, %v1509_v47 }
 0x29e   :  { %v1783_v55 = vadd.f32 %v1782_v49, %v1781_v45  ;;  %v1786_v1 = vsel %vm1712_vm1, %v1685_v51, 0.0 }
 0x29f   :  { %v1784_v57 = vsel %vm1712_vm1, %v1684_v53, 0.0  ;;  %v2431_v59 = vpop.f32.mrb[70].mxu1 }
 0x2a0   :  { %v1785_v61 = vadd.f32 %v1784_v57, %v1783_v55  ;;  %v1519_v63 = vpop.f32.mrb[71].mxu1  ;;  %v1687_v3 = vmul.f32 %v2431_v59, %v2431_v59 }
 0x2a1   :  { %v1686_v5 = vmul.f32 %v1519_v63, %v1519_v63 }
 0x2a2   :  { %v1787_v7 = vadd.f32 %v1786_v1, %v1785_v61  ;;  %v1790_v17 = vsel %vm1712_vm1, %v1687_v3, 0.0 }
 0x2a3   :  { %v1788_v9 = vsel %vm1712_vm1, %v1686_v5, 0.0  ;;  %v2434_v11 = vpop.f32.mrb[72].mxu1 }
 0x2a4   :  { %v1789_v15 = vadd.f32 %v1788_v9, %v1787_v7  ;;  %v1529_v33 = vpop.f32.mrb[73].mxu1  ;;  %v1689_v35 = vmul.f32 %v2434_v11, %v2434_v11 }
 0x2a5   :  { %v1688_v56 = vmul.f32 %v1529_v33, %v1529_v33 }
 0x2a6   :  { %v1791_v25 = vadd.f32 %v1790_v17, %v1789_v15  ;;  %v1794_v48 = vsel %vm1712_vm1, %v1689_v35, 0.0 }
 0x2a7   :  { %v1792_v16 = vsel %vm1712_vm1, %v1688_v56, 0.0  ;;  %v2437_v46 = vpop.f32.mrb[74].mxu1 }
 0x2a8   :  { %v1793_v38 = vadd.f32 %v1792_v16, %v1791_v25  ;;  %v1539_v32 = vpop.f32.mrb[75].mxu1  ;;  %v1691_v24 = vmul.f32 %v2437_v46, %v2437_v46 }
 0x2a9   :  { %v1690_v40 = vmul.f32 %v1539_v32, %v1539_v32 }
 0x2aa   :  { %v1795_v58 = vadd.f32 %v1794_v48, %v1793_v38  ;;  %v1798_v4 = vsel %vm1712_vm1, %v1691_v24, 0.0 }
 0x2ab   :  { %v1796_v28 = vsel %vm1712_vm1, %v1690_v40, 0.0  ;;  %v2440_v10 = vpop.f32.mrb[76].mxu1 }
 0x2ac   :  { %v1797_v13 = vadd.f32 %v1796_v28, %v1795_v58  ;;  %v1549_v60 = vpop.f32.mrb[77].mxu1  ;;  %v1693_v19 = vmul.f32 %v2440_v10, %v2440_v10 }
 0x2ad   :  { %v1692_v31 = vmul.f32 %v1549_v60, %v1549_v60 }
 0x2ae   :  { %v1799_v50 = vadd.f32 %v1798_v4, %v1797_v13  ;;  %v1802_v8 = vsel %vm1712_vm1, %v1693_v19, 0.0 }
 0x2af   :  { %v1800_v21 = vsel %vm1712_vm1, %v1692_v31, 0.0  ;;  %v2443_v34 = vpop.f32.mrb[78].mxu1 }
 0x2b0   :  { %v1801_v52 = vadd.f32 %v1800_v21, %v1799_v50  ;;  %v1559_v42 = vpop.f32.mrb[79].mxu1  ;;  %v1695_v20 = vmul.f32 %v2443_v34, %v2443_v34 }
 0x2b1   :  { %v1694_v44 = vmul.f32 %v1559_v42, %v1559_v42 }
 0x2b2   :  { %v1803_v36 = vadd.f32 %v1802_v8, %v1801_v52  ;;  %v1806_v62 = vsel %vm1712_vm1, %v1695_v20, 0.0 }
 0x2b3   :  { %v1804_v23 = vsel %vm1712_vm1, %v1694_v44, 0.0  ;;  %v2446_v18 = vpop.f32.mrb[80].mxu1 }
 0x2b4   :  { %v1805_v30 = vadd.f32 %v1804_v23, %v1803_v36  ;;  %v1569_v54 = vpop.f32.mrb[81].mxu1  ;;  %v1697_v2 = vmul.f32 %v2446_v18, %v2446_v18 }
 0x2b5   :  { %v1696_v26 = vmul.f32 %v1569_v54, %v1569_v54 }
 0x2b6   :  { %v1807_v14 = vadd.f32 %v1806_v62, %v1805_v30  ;;  %v1810_v29 = vsel %vm1712_vm1, %v1697_v2, 0.0 }
 0x2b7   :  { %v1808_v6 = vsel %vm1712_vm1, %v1696_v26, 0.0  ;;  %v2449_v0 = vpop.f32.mrb[82].mxu1 }
 0x2b8   :  { %v1809_v12 = vadd.f32 %v1808_v6, %v1807_v14  ;;  %v1579_v27 = vpop.f32.mrb[83].mxu1  ;;  %v1699_v22 = vmul.f32 %v2449_v0, %v2449_v0 }
 0x2b9   :  { %v1698_v37 = vmul.f32 %v1579_v27, %v1579_v27 }
 0x2ba   :  { %v1811_v39 = vadd.f32 %v1810_v29, %v1809_v12  ;;  %v1814_v49 = vsel %vm1712_vm1, %v1699_v22, 0.0 }
 0x2bb   :  { %v1812_v41 = vsel %vm1712_vm1, %v1698_v37, 0.0  ;;  %v2452_v43 = vpop.f32.mrb[84].mxu1 }
 0x2bc   :  { %v1813_v45 = vadd.f32 %v1812_v41, %v1811_v39  ;;  %v1589_v47 = vpop.f32.mrb[85].mxu1  ;;  %v1701_v51 = vmul.f32 %v2452_v43, %v2452_v43 }
 0x2bd   :  { %v1700_v53 = vmul.f32 %v1589_v47, %v1589_v47 }
 0x2be   :  { %v1815_v55 = vadd.f32 %v1814_v49, %v1813_v45  ;;  %v1818_v1 = vsel %vm1712_vm1, %v1701_v51, 0.0 }
 0x2bf   :  { %v1816_v57 = vsel %vm1712_vm1, %v1700_v53, 0.0  ;;  %v2455_v59 = vpop.f32.mrb[86].mxu1 }
 0x2c0   :  { %v1817_v61 = vadd.f32 %v1816_v57, %v1815_v55  ;;  %v1599_v63 = vpop.f32.mrb[87].mxu1  ;;  %v1703_v3 = vmul.f32 %v2455_v59, %v2455_v59 }
 0x2c1   :  { %v1702_v5 = vmul.f32 %v1599_v63, %v1599_v63 }
 0x2c2   :  { %v1819_v7 = vadd.f32 %v1818_v1, %v1817_v61  ;;  %v1822_v17 = vsel %vm1712_vm1, %v1703_v3, 0.0 }
 0x2c3   :  { %v1820_v9 = vsel %vm1712_vm1, %v1702_v5, 0.0  ;;  %v2458_v11 = vpop.f32.mrb[88].mxu1 }
 0x2c4   :  { %v1821_v15 = vadd.f32 %v1820_v9, %v1819_v7  ;;  %v1609_v33 = vpop.f32.mrb[89].mxu1  ;;  %v1705_v35 = vmul.f32 %v2458_v11, %v2458_v11 }
 0x2c5   :  { %v1704_v56 = vmul.f32 %v1609_v33, %v1609_v33 }
 0x2c6   :  { %v1823_v25 = vadd.f32 %v1822_v17, %v1821_v15  ;;  %v1826_v48 = vsel %vm1712_vm1, %v1705_v35, 0.0 }
 0x2c7   :  { %v1824_v16 = vsel %vm1712_vm1, %v1704_v56, 0.0  ;;  %v2461_v46 = vpop.f32.mrb[90].mxu1 }
 0x2c8   :  { %v1825_v38 = vadd.f32 %v1824_v16, %v1823_v25  ;;  %v1619_v32 = vpop.f32.mrb[91].mxu1  ;;  %v1707_v24 = vmul.f32 %v2461_v46, %v2461_v46 }
 0x2c9   :  { %v1706_v40 = vmul.f32 %v1619_v32, %v1619_v32 }
 0x2ca   :  { %v1827_v58 = vadd.f32 %v1826_v48, %v1825_v38  ;;  %v1830_v4 = vsel %vm1712_vm1, %v1707_v24, 0.0 }
 0x2cb   :  { %v1828_v28 = vsel %vm1712_vm1, %v1706_v40, 0.0  ;;  %v2464_v10 = vpop.f32.mrb[92].mxu1 }
 0x2cc   :  { %v1829_v13 = vadd.f32 %v1828_v28, %v1827_v58  ;;  %v1629_v60 = vpop.f32.mrb[93].mxu1  ;;  %v1709_v19 = vmul.f32 %v2464_v10, %v2464_v10 }
 0x2cd   :  { %v1708_v31 = vmul.f32 %v1629_v60, %v1629_v60 }
 0x2ce   :  { %v1831_v50 = vadd.f32 %v1830_v4, %v1829_v13  ;;  %v1834_v8 = vsel %vm1712_vm1, %v1709_v19, 0.0 }
 0x2cf   :  { %v1832_v21 = vsel %vm1712_vm1, %v1708_v31, 0.0  ;;  %v2467_v34 = vpop.f32.mrb[94].mxu1 }
 0x2d0   :  { %v1833_v52 = vadd.f32 %v1832_v21, %v1831_v50  ;;  %v1639_v42 = vpop.f32.mrb[95].mxu1  ;;  %v1711_v20 = vmul.f32 %v2467_v34, %v2467_v34 }
 0x2d1   :  { %v1710_v44 = vmul.f32 %v1639_v42, %v1639_v42 }
 0x2d2   :  { %v1835_v36 = vadd.f32 %v1834_v8, %v1833_v52  ;;  %v1838_v30 = vsel %vm1712_vm1, %v1711_v20, 0.0 }
 0x2d3   :  { %v1836_v23 = vsel %vm1712_vm1, %v1710_v44, 0.0 }
 0x2d4   :  { %v1837_v18 = vadd.f32 %v1836_v23, %v1835_v36 }
 0x2d6   :  { %v1839_v54 = vadd.f32 %v1838_v30, %v1837_v18 }
 0x2d8   :  { %v1840_v62 = vrot.slane %v1839_v54, 4 }
 0x2da   :  { %v1841_v2 = vadd.f32 %v1840_v62, %v1839_v54 }
 0x2dc   :  { %v1842_v26 = vrot.slane %v1841_v2, 2 }
 0x2de   :  { %v1843_v14 = vadd.f32 %v1842_v26, %v1841_v2 }
 0x2e0   :  { %v1844_v6 = vrot.slane %v1843_v14, 1 }
 0x2e2   :  { %v1845_v0 = vadd.f32 %v1844_v6, %v1843_v14 }
 0x2e4   :  { %v1846_v12 = vmul.f32 0.001953125, %v1845_v0 }
 0x2e6   :  { %1848 = vst.msk [vmem:[#allocation2] sm:$0x1] %vm1847_vm2, %v1846_v12 }
 0x2e7   :  { %2536 = shalt.err (!%p2533_p4)
}
 0x2e8   :  { %s2537_s20 = scalar_lea.hbm %s3584_s4, 16 }
 0x2e9   :  { %p2538_p5 = scmp.ne.s32.totalorder %s3584_s4, %s2537_s20  ;;  %p2541_p6 = scmp.lt.u32.totalorder %s2537_s20, %s3584_s4 }
 0x2eb   :  { %p2543_p7 = pnand %p2541_p6, %p2538_p5 }
 0x2ed   :  { %2546 = shalt.err (!%p2543_p7)
}
 0x2ee   :  { %1858 = dma.vmem_to_hbm [thread:$0]  %s1856_s15, 16, %s3584_s4, [#allocation3]  }
 0x2ef   :  { %2547 = dma.done.wait [#allocation3], 16  }
 0x2f0   :  { %2548 = vsyncadd [#allocation3], 4294967280 }
 0x2f1   :  { %1862 = vsyncpa [#allocation3], 1 }

</bundles_post_ra>
